<compile_context>
chip_gen: v7x
topology: tpu7x:2x2x1
jax: 0.10.0
libtpu: 0.0.40
codegen_flags: <defaults>
</compile_context>

<pallas_src>
import numpy as np
import jax
import jax.numpy as jnp
from jax import lax
from jax.experimental import pallas as pl
from jax.experimental.pallas import tpu as pltpu

BN_EPS = 1e-5
# Conservative VMEM guard (v5e scoped default is 16 MiB; leave room for
# double-buffering + activations on all generations).
_WEIGHT_VMEM_BUDGET_BYTES = 12 * 1024 * 1024


def _celu(x):
    # CELU with alpha=1: x if x > 0 else exp(x) - 1
    return jnp.where(x > 0, x, jnp.exp(jnp.minimum(x, 0.0)) - 1.0)


# ---------------------------------------------------------------------------
# Host-side (setup-time) folding of the decoder's linear operators.
# ---------------------------------------------------------------------------
def _bilinear_up2_matrix_1d(n):
    """(2n, n) matrix of torch Upsample(scale_factor=2, mode='linear'/'bilinear',
    align_corners=False) along one axis (half-pixel centers, edge clamped)."""
    U = np.zeros((2 * n, n), dtype=np.float64)
    for o in range(2 * n):
        src = max(0.5 * o - 0.25, 0.0)
        i0 = min(int(np.floor(src)), n - 1)
        i1 = min(i0 + 1, n - 1)
        lam = src - i0
        U[o, i0] += 1.0 - lam
        U[o, i1] += lam
    return U


def _upsample2_matrix_2d(H, W):
    """(4HW, HW) separable bilinear x2 upsample on a row-major flattened image."""
    return np.kron(_bilinear_up2_matrix_1d(H), _bilinear_up2_matrix_1d(W))


def _circular_conv_matrix(w_hwio, H, W):
    """Dense (Cout*H*W, Cin*H*W) matrix of a stride-1 Conv2d with circular padding
    (PyTorch padding=(K-1)//2, padding_mode='circular') on an HxW image."""
    K, _, Cin, Cout = w_hwio.shape
    left = (K - 1) // 2
    w = np.asarray(w_hwio, dtype=np.float64)
    M = np.zeros((Cout, H, W, Cin, H, W), dtype=np.float64)
    for kh in range(K):
        for kw in range(K):
            wk_t = w[kh, kw].T                      # (Cout, Cin)
            for y in range(H):
                sy = (y + kh - left) % H
                for x in range(W):
                    sx = (x + kw - left) % W
                    M[:, y, x, :, sy, sx] += wk_t
    return M.reshape(Cout * H * W, Cin * H * W)


def build_folded_params(params, weight_dtype=jnp.bfloat16):
    """Fold the whole linear pipeline of each conv block (upsample -> circular conv
    -> eval-mode BatchNorm -> bias) into one dense matrix on the (C,H,W)-flattened
    activation, and fold the expansion Linear into the FIRST block (no nonlinearity
    in between).  Built in float64 on the host; weights returned as bf16, biases as
    f32 (done once, not per call)."""
    Wl, bl = params["linear"]
    C0, H0, W0 = params["first_shape"]
    Wl = np.asarray(Wl, np.float64)                   # (L, C0*H0*W0)
    bl = np.asarray(bl, np.float64)                   # (C0*H0*W0,)

    H, W, Cin = H0, W0, C0
    mats, biases = [], []
    for layer in params["conv"]:
        # Guards for the only path that this exact fold is valid for.
        assert not layer.get("conv_transpose", False)
        assert layer["K"] % 2 == 1 and layer.get("stride", 1) == 1
        assert layer["up"] in (1, 2)
        up = layer["up"]
        Hb, Wb = H * up, W * up
        U = _upsample2_matrix_2d(H, W) if up == 2 else np.eye(H * W)
        w = np.asarray(layer["w"], dtype=np.float64)                   # (K, K, Cin, Cout)
        Cout = w.shape[-1]
        M = _circular_conv_matrix(w, Hb, Wb) @ np.kron(np.eye(Cin), U)  # (Cout*Pb, Cin*P)
        if layer["bn"]:
            # Fresh eval-mode BatchNorm (mean=0, var=1, affine=False) -> pure scale.
            M = M / np.sqrt(1.0 + BN_EPS)
        bflat = (np.zeros(Cout * Hb * Wb, np.float64) if layer["bias"] is None else
                 np.repeat(np.asarray(layer["bias"], np.float64), Hb * Wb))
        mats.append(M)
        biases.append(bflat)
        H, W, Cin = Hb, Wb, Cout

    assert len(mats) == 2, "kernel is specialized to 2 conv blocks"
    # Fold the expansion Linear into block 1:  x1_pre = z @ (Wl @ M1^T) + bl @ M1^T.
    W1 = Wl @ mats[0].T                                # (L, F1)
    b1 = bl @ mats[0].T + biases[0]                    # (F1,)  (block-1 conv has no bias)
    W2T = mats[1].T                                    # (F1, F2)
    b2 = biases[1]                                     # (F2,)

    folded = {
        "W1": jnp.asarray(W1, weight_dtype),
        "b1": jnp.asarray(b1.reshape(1, -1), jnp.float32),
        "W2T": jnp.asarray(W2T, weight_dtype),
        "b2": jnp.asarray(b2.reshape(1, -1), jnp.float32),
        "out_chw": (Cin, H, W),
    }
    weight_bytes = (folded["W1"].size + folded["W2T"].size) * folded["W1"].dtype.itemsize \
        + (folded["b1"].size + folded["b2"].size) * 4
    # Double-buffered worst case must fit comfortably in scoped VMEM everywhere.
    assert 2 * weight_bytes < _WEIGHT_VMEM_BUDGET_BYTES, (
        "folded weights too large for the dense-fold path; tile m2t's N dim or use "
        "a roll-based conv kernel")
    folded["weight_bytes"] = weight_bytes
    return folded


# ---------------------------------------------------------------------------
# Fused Pallas kernel: the whole decoder in one call, everything in VMEM.
# ---------------------------------------------------------------------------
def _decoder_kernel(z_ref, w1_ref, b1_ref, w2_ref, b2_ref, o_ref):
    # Block 1: [Linear -> view -> bilinear up x2 -> circular conv3 -> eval BN]
    # all folded into W1/b1; CELU epilogue.
    x1 = jnp.dot(z_ref[...].astype(w1_ref.dtype), w1_ref[...],
                 preferred_element_type=jnp.float32) + b1_ref[...]
    x1 = _celu(x1)
    # Block 2: [bilinear up x2 -> circular conv3 + bias] folded into W2T/b2.
    x2 = jnp.dot(x1.astype(w2_ref.dtype), w2_ref[...],
                 preferred_element_type=jnp.float32) + b2_ref[...]
    o_ref[...] = jnp.tanh(x2).astype(o_ref.dtype)


def make_fused_decoder(B, L, folded, out_dtype=jnp.float32):
    """Build the single fused pallas_call once; return a jitted forward(z)."""
    W1, b1, W2T, b2 = folded["W1"], folded["b1"], folded["W2T"], folded["b2"]
    C, H, W = folded["out_chw"]
    F1, F2 = W1.shape[1], W2T.shape[1]
    assert W1.shape[0] == L and W2T.shape[0] == F1 and C * H * W == F2

    # Pad the batch to full (8-sublane) tiles; tile rows over a parallel grid axis
    # so stacked batches amortize the (VMEM-resident) weight DMA and use both
    # TensorCores on v7x.
    TB = 8 if B <= 128 else 128
    Bpad = ((B + TB - 1) // TB) * TB
    grid = (Bpad // TB,)

    cost = pl.CostEstimate(
        flops=2 * Bpad * (L * F1 + F1 * F2),
        transcendentals=Bpad * (F1 + F2),                       # CELU exp + tanh
        bytes_accessed=int(folded["weight_bytes"]
                           + Bpad * L * 4 + Bpad * F2 * np.dtype(out_dtype).itemsize),
    )

    call = pl.pallas_call(
        _decoder_kernel,
        out_shape=jax.ShapeDtypeStruct((Bpad, F2), out_dtype),
        grid=grid,
        in_specs=[
            pl.BlockSpec((TB, L), lambda i: (i, 0)),    # latent rows (tiled)
            pl.BlockSpec((L, F1), lambda i: (0, 0)),    # folded Linear+block1 weight (bf16)
            pl.BlockSpec((1, F1), lambda i: (0, 0)),    # folded block-1 bias (f32)
            pl.BlockSpec((F1, F2), lambda i: (0, 0)),   # folded block-2 weight (bf16)
            pl.BlockSpec((1, F2), lambda i: (0, 0)),    # block-2 bias, broadcast over pixels
        ],
        out_specs=pl.BlockSpec((TB, F2), lambda i: (i, 0)),
        compiler_params=pltpu.CompilerParams(dimension_semantics=("parallel",)),
        cost_estimate=cost,
    )

    @jax.jit
    def forward(z):
        zp = jnp.pad(z, ((0, Bpad - B), (0, 0)))
        flat = call(zp, W1, b1, W2T, b2)               # (Bpad, C*H*W), NCHW flatten order
        return flat[:B].reshape(B, C, H, W)

    return forward


# ---------------------------------------------------------------------------
# Pure-JAX reference (mirrors the PyTorch layer sequence) for validation.
# ---------------------------------------------------------------------------
def _upsample_bilinear2x_ref(x_nchw):
    """torch.nn.Upsample(scale_factor=2, mode='bilinear', align_corners=False)."""
    def idx(n):
        o = np.arange(2 * n)
        src = np.maximum(0.5 * o - 0.25, 0.0)
        i0 = np.minimum(np.floor(src).astype(np.int32), n - 1)
        i1 = np.minimum(i0 + 1, n - 1)
        w1 = (src - i0).astype(np.float32)
        w0 = (1.0 - w1).astype(np.float32)
        return i0, i1, w0, w1

    H, W = x_nchw.shape[-2:]
    i0, i1, h0, h1 = idx(H)
    x = (x_nchw[:, :, i0, :] * h0[None, None, :, None]
         + x_nchw[:, :, i1, :] * h1[None, None, :, None])
    j0, j1, v0, v1 = idx(W)
    return x[:, :, :, j0] * v0 + x[:, :, :, j1] * v1


def reference_forward(z, params):
    Wl, bl = params["linear"]
    C0, H0, W0 = params["first_shape"]
    h = jnp.dot(z, Wl, precision=lax.Precision.HIGHEST) + bl
    h = h.reshape(-1, C0, H0, W0)
    for layer in params["conv"]:
        if layer["up"] > 1:
            h = _upsample_bilinear2x_ref(h)
        K = layer["K"]
        left, right = (K - 1) // 2, K // 2
        hp = jnp.pad(h, ((0, 0), (0, 0), (left, right), (left, right)), mode="wrap")
        w_oihw = jnp.transpose(layer["w"], (3, 2, 0, 1))
        h = lax.conv_general_dilated(hp, w_oihw, (1, 1), "VALID",
                                     dimension_numbers=("NCHW", "OIHW", "NCHW"),
                                     precision=lax.Precision.HIGHEST)
        if layer["bias"] is not None:
            h = h + layer["bias"][None, :, None, None]
        if layer["bn"]:
            h = h / jnp.sqrt(1.0 + BN_EPS)
        if layer["act"]:
            h = _celu(h)
    return jnp.tanh(h)


# ---------------------------------------------------------------------------
if __name__ == "__main__":
    key = jax.random.PRNGKey(0)
    keys = jax.random.split(key, 6)

    B = 2
    latent = 32
    C0, H0, W0 = 16, 4, 4          # conv_layers_channels[0], first_layer_shape
    conv_channels = [16, 8]        # conv_layers_channels
    out_channels = 4               # output_channels

    # Deterministic synthetic parameter init (fan-in scaled normal).
    # TODO(synk): apply_custom_initialization is not defined in the spec.
    Wl = jax.random.normal(keys[0], (latent, C0 * H0 * W0), jnp.float32) / np.sqrt(latent)
    bl = 0.1 * jax.random.normal(keys[1], (C0 * H0 * W0,), jnp.float32)
    # Conv block 1: batch_norm=True  -> Conv2d bias=False.
    w1 = jax.random.normal(keys[2], (3, 3, conv_channels[0], conv_channels[1]),
                           jnp.float32) / np.sqrt(3 * 3 * conv_channels[0])
    # Conv block 2 (last): no batch norm -> Conv2d bias=True.
    w2 = jax.random.normal(keys[3], (3, 3, conv_channels[1], out_channels),
                           jnp.float32) / np.sqrt(3 * 3 * conv_channels[1])
    b2 = 0.1 * jax.random.normal(keys[4], (out_channels,), jnp.float32)

    params = {
        "linear": (Wl, bl),
        "first_shape": (C0, H0, W0),
        "conv": [
            dict(w=w1, bias=None, K=3, stride=1, up=2, bn=True, act=True),
            dict(w=w2, bias=b2, K=3, stride=1, up=2, bn=False, act=False),
        ],
    }

    z = jax.random.normal(keys[5], (B, latent), jnp.float32)

    folded = build_folded_params(params)        # one-time host-side folding (bf16 weights)
    forward = make_fused_decoder(B, latent, folded)

    out = jax.block_until_ready(forward(z))
    assert out.shape == (B, out_channels, 4 * H0, 4 * W0), out.shape

    ref = reference_forward(z, params)
    np.testing.assert_allclose(np.asarray(out), np.asarray(ref), rtol=1e-2, atol=1e-2)

    print("KERNEL_OK")
</pallas_src>

<mosaic_0001>
module attributes {stable_mosaic.version = 11 : i64} {
  func.func @_decoder_kernel(%arg0: i32, %arg1: memref<8x32xf32, #tpu.memory_space<vmem>>, %arg2: memref<32x512xbf16, #tpu.memory_space<vmem>>, %arg3: memref<1x512xf32, #tpu.memory_space<vmem>>, %arg4: memref<512x1024xbf16, #tpu.memory_space<vmem>>, %arg5: memref<1x1024xf32, #tpu.memory_space<vmem>>, %arg6: memref<8x1024xf32, #tpu.memory_space<vmem>>) attributes {dimension_semantics = [#tpu.dimension_semantics<parallel>], iteration_bounds = array<i64: 1>, scalar_prefetch = 0 : i64, scratch_operands = 0 : i64, tpu.core_type = #tpu.core_type<tc>, window_params = [{transform_indices = @transform_0, window_bounds = array<i64: 8, 32>}, {pipeline_mode = #tpu.pipeline_mode<synchronous>, transform_indices = @transform_1, window_bounds = array<i64: 32, 512>}, {pipeline_mode = #tpu.pipeline_mode<synchronous>, transform_indices = @transform_2, window_bounds = array<i64: 1, 512>}, {pipeline_mode = #tpu.pipeline_mode<synchronous>, transform_indices = @transform_3, window_bounds = array<i64: 512, 1024>}, {pipeline_mode = #tpu.pipeline_mode<synchronous>, transform_indices = @transform_4, window_bounds = array<i64: 1, 1024>}, {transform_indices = @transform_5, window_bounds = array<i64: 8, 1024>}]} {
    %c0 = arith.constant 0 : index
    %c0_0 = arith.constant 0 : index
    %0 = vector.load %arg1[%c0, %c0_0] : memref<8x32xf32, #tpu.memory_space<vmem>>, vector<8x32xf32>
    %1 = arith.truncf %0 : vector<8x32xf32> to vector<8x32xbf16>
    %c0_1 = arith.constant 0 : index
    %c0_2 = arith.constant 0 : index
    %2 = vector.load %arg2[%c0_1, %c0_2] : memref<32x512xbf16, #tpu.memory_space<vmem>>, vector<32x512xbf16>
    %cst = arith.constant dense<0.000000e+00> : vector<8x512xf32>
    %3 = tpu.matmul %1, %2, %cst {dimension_numbers = #tpu.dot_dimension_numbers<[1], [0], [0], [1], [0, 0, 1, 1], [], []>} : vector<8x32xbf16>, vector<32x512xbf16>, vector<8x512xf32> -> vector<8x512xf32>
    %c0_3 = arith.constant 0 : index
    %c0_4 = arith.constant 0 : index
    %4 = vector.load %arg3[%c0_3, %c0_4] : memref<1x512xf32, #tpu.memory_space<vmem>>, vector<1x512xf32>
    %5 = vector.broadcast %4 : vector<1x512xf32> to vector<8x512xf32>
    %6 = arith.addf %3, %5 : vector<8x512xf32>
    %cst_5 = arith.constant 0.000000e+00 : f32
    %7 = vector.broadcast %cst_5 : f32 to vector<8x512xf32>
    %8 = arith.cmpf ogt, %6, %7 : vector<8x512xf32>
    %cst_6 = arith.constant 0.000000e+00 : f32
    %9 = vector.broadcast %cst_6 : f32 to vector<8x512xf32>
    %10 = arith.minimumf %6, %9 : vector<8x512xf32>
    %11 = math.exp %10 : vector<8x512xf32>
    %cst_7 = arith.constant 1.000000e+00 : f32
    %12 = vector.broadcast %cst_7 : f32 to vector<8x512xf32>
    %13 = arith.subf %11, %12 : vector<8x512xf32>
    %14 = arith.select %8, %6, %13 : vector<8x512xi1>, vector<8x512xf32>
    %15 = arith.truncf %14 : vector<8x512xf32> to vector<8x512xbf16>
    %c0_8 = arith.constant 0 : index
    %c0_9 = arith.constant 0 : index
    %16 = vector.load %arg4[%c0_8, %c0_9] : memref<512x1024xbf16, #tpu.memory_space<vmem>>, vector<512x1024xbf16>
    %cst_10 = arith.constant dense<0.000000e+00> : vector<8x1024xf32>
    %17 = tpu.matmul %15, %16, %cst_10 {dimension_numbers = #tpu.dot_dimension_numbers<[1], [0], [0], [1], [0, 0, 1, 1], [], []>} : vector<8x512xbf16>, vector<512x1024xbf16>, vector<8x1024xf32> -> vector<8x1024xf32>
    %c0_11 = arith.constant 0 : index
    %c0_12 = arith.constant 0 : index
    %18 = vector.load %arg5[%c0_11, %c0_12] : memref<1x1024xf32, #tpu.memory_space<vmem>>, vector<1x1024xf32>
    %19 = vector.broadcast %18 : vector<1x1024xf32> to vector<8x1024xf32>
    %20 = arith.addf %17, %19 : vector<8x1024xf32>
    %21 = math.tanh %20 : vector<8x1024xf32>
    %c0_13 = arith.constant 0 : index
    %c0_14 = arith.constant 0 : index
    %22 = vector.load %arg6[%c0_13, %c0_14] : memref<8x1024xf32, #tpu.memory_space<vmem>>, vector<8x1024xf32>
    tpu.vector_store %arg6[%c0_13, %c0_14], %21 {strides = array<i32>} : memref<8x1024xf32, #tpu.memory_space<vmem>>, vector<8x1024xf32>,
    return
  }
  func.func @transform_0(%arg0: i32) -> (i32, i32) {
    %c0_i32 = arith.constant 0 : i32
    %c0_i32_0 = arith.constant 0 : i32
    return %arg0, %c0_i32 : i32, i32
  }
  func.func @transform_1(%arg0: i32) -> (i32, i32) {
    %c0_i32 = arith.constant 0 : i32
    %c0_i32_0 = arith.constant 0 : i32
    %c0_i32_1 = arith.constant 0 : i32
    return %c0_i32, %c0_i32_0 : i32, i32
  }
  func.func @transform_2(%arg0: i32) -> (i32, i32) {
    %c0_i32 = arith.constant 0 : i32
    %c0_i32_0 = arith.constant 0 : i32
    %c0_i32_1 = arith.constant 0 : i32
    return %c0_i32, %c0_i32_0 : i32, i32
  }
  func.func @transform_3(%arg0: i32) -> (i32, i32) {
    %c0_i32 = arith.constant 0 : i32
    %c0_i32_0 = arith.constant 0 : i32
    %c0_i32_1 = arith.constant 0 : i32
    return %c0_i32, %c0_i32_0 : i32, i32
  }
  func.func @transform_4(%arg0: i32) -> (i32, i32) {
    %c0_i32 = arith.constant 0 : i32
    %c0_i32_0 = arith.constant 0 : i32
    %c0_i32_1 = arith.constant 0 : i32
    return %c0_i32, %c0_i32_0 : i32, i32
  }
  func.func @transform_5(%arg0: i32) -> (i32, i32) {
    %c0_i32 = arith.constant 0 : i32
    %c0_i32_0 = arith.constant 0 : i32
    return %arg0, %c0_i32 : i32, i32
  }
}

</mosaic_0001>

<bundles_post_ra>
// kernel: forward.1
= control target key start
LH: loop header
LB: loop body
LE: loop exit
PB: predicated region body
PF: predicated region fallthrough
CT: control target
= control target key end

     0   :  { %v2464_v1 = vmov 0   ;;  %vm93_vm0 = vcmask 261120   ;;  %s3408_s1 = inlined_call_operand.vmem [shape: bf16[32,512], index: 1, kind: input, shape index: {}]   ;;  %s3409_s0 = inlined_call_operand.vmem [shape: f32[8,32], index: 0, kind: input, shape index: {}]   ;;  %s3410_s3 = inlined_call_operand.vmem [shape: bf16[512,1024], index: 3, kind: input, shape index: {}]   ;;  %s3411_s2 = inlined_call_operand.vmem [shape: f32[1,512], index: 2, kind: input, shape index: {}]   ;;  %s3412_s4 = inlined_call_operand.vmem [shape: f32[1,1024], index: 4, kind: input, shape index: {}]   ;;  %s3413_s5 = inlined_call_operand.vmem [shape: f32[8,1024], index: 5, kind: output, shape index: {}]  }
   0x1   :  { %v2428_v0 = vld [vmem:[%s3408_s1 + $0x4] ss:$16 sps:$4 sm:$0xff]   ;;  %129 = vmatprep.mubr.bf16.mxu0 %v2464_v1  ;;  %170 = vmatprep.mubr.bf16.mxu1 %v2464_v1  ;;  %v2430_v2 = vld [vmem:[%s3408_s1] ss:$16 sps:$4 sm:$0xff]   ;;  %v2434_v6 = vld [vmem:[%s3408_s1 + $0xc] ss:$16 sps:$4 sm:$0xff]  }
   0x2   :  { %97 = vmatprep.subr.bf16.mxu0 %v2428_v0  ;;  %v2431_v3 = vld [vmem:[%s3408_s1 + $0x24] ss:$16 sps:$4 sm:$0xff]   ;;  %v2433_v4 = vld [vmem:[%s3408_s1 + $0x20] ss:$16 sps:$4 sm:$0xff]   ;;  %v2436_v7 = vld [vmem:[%s3408_s1 + $0x8] ss:$16 sps:$4 sm:$0xff]   ;;  %138 = vmatprep.subr.bf16.mxu1 %v2434_v6 }
   0x3   :  { %v21_v5 = vld [vmem:[%s3409_s0] sm:$0xff]  ;;  %98 = vmatpush1.bf16.msra.mxu0 %v2430_v2  ;;  %v2437_v8 = vld [vmem:[%s3408_s1 + $0x2c] ss:$16 sps:$4 sm:$0xff]   ;;  %v2439_v9 = vld [vmem:[%s3408_s1 + $0x28] ss:$16 sps:$4 sm:$0xff]   ;;  %139 = vmatpush1.bf16.msra.mxu1 %v2436_v7 }
   0x4   :  { %99 = vmatprep.subr.bf16.mxu0 %v2431_v3  ;;  %v207_v10 = vld [vmem:[%s3410_s3] sm:$0xff]  ;;  %v22_v11 = vpack.c.bf16 %v21_v5, %v21_v5  ;;  %v208_v13 = vld [vmem:[%s3410_s3 + $0x8] sm:$0xff]  ;;  %140 = vmatprep.subr.bf16.mxu1 %v2437_v8 }
   0x5   :  { %v211_v12 = vld [vmem:[%s3410_s3 + $0x20] sm:$0xff]  ;;  %v212_v14 = vld [vmem:[%s3410_s3 + $0x28] sm:$0xff] }
   0x6   :  { %v2147_v15 = vcombine.low %v207_v10, %v211_v12  ;;  %v2148_v16 = vcombine.high %v207_v10, %v211_v12  ;;  %v215_v17 = vld [vmem:[%s3410_s3 + $0x40] sm:$0xff]  ;;  %v2150_v19 = vcombine.high %v208_v13, %v212_v14  ;;  %v216_v21 = vld [vmem:[%s3410_s3 + $0x48] sm:$0xff]  ;;  %v2149_v25 = vcombine.low %v208_v13, %v212_v14 }
   0x7   :  { %100 = vmatpush1.bf16.msra.mxu0 %v2433_v4  ;;  %v219_v18 = vld [vmem:[%s3410_s3 + $0x60] sm:$0xff]  ;;  %v220_v22 = vld [vmem:[%s3410_s3 + $0x68] sm:$0xff]  ;;  %141 = vmatpush1.bf16.msra.mxu1 %v2439_v9 }
   0x8   :  { %v2156_v20 = vcombine.high %v215_v17, %v219_v18  ;;  %1785 = vmatprep.subr.bf16.mxu0 %v2148_v16  ;;  %v223_v23 = vld [vmem:[%s3410_s3 + $0x80] sm:$0xff]  ;;  %1867 = vmatprep.subr.bf16.mxu1 %v2150_v19  ;;  %v2155_v26 = vcombine.low %v215_v17, %v219_v18  ;;  %v2158_v27 = vcombine.high %v216_v21, %v220_v22  ;;  %v224_v29 = vld [vmem:[%s3410_s3 + $0x88] sm:$0xff] }
   0x9   :  { %v227_v24 = vld [vmem:[%s3410_s3 + $0xa0] sm:$0xff]  ;;  %v228_v30 = vld [vmem:[%s3410_s3 + $0xa8] sm:$0xff]  ;;  %v2157_v33 = vcombine.low %v216_v21, %v220_v22 }
   0xa   :  { %2141 = vmatmul.mubr.msk.bf16.vlgmr.msra.gmra.mrb[0].mxu0 %vm93_vm0, %v22_v11  ;;  %v2164_v28 = vcombine.high %v223_v23, %v227_v24  ;;  %2142 = vmatmul.mubr.msk.bf16.vlgmr.msra.gmra.mrb[0].mxu1 %vm93_vm0, %v22_v11  ;;  %v231_v31 = vld [vmem:[%s3410_s3 + $0xc0] sm:$0xff]  ;;  %v2163_v34 = vcombine.low %v223_v23, %v227_v24  ;;  %v2166_v35 = vcombine.high %v224_v29, %v228_v30  ;;  %v232_v37 = vld [vmem:[%s3410_s3 + $0xc8] sm:$0xff] }
   0xb   :  { %1786 = vmatpush1.bf16.msra.mxu0 %v2147_v15  ;;  %v235_v32 = vld [vmem:[%s3410_s3 + $0xe0] sm:$0xff]  ;;  %1868 = vmatpush1.bf16.msra.mxu1 %v2149_v25  ;;  %v236_v38 = vld [vmem:[%s3410_s3 + $0xe8] sm:$0xff]  ;;  %v2165_v41 = vcombine.low %v224_v29, %v228_v30 }
   0xc   :  { %1787 = vmatprep.subr.bf16.mxu0 %v2156_v20  ;;  %1869 = vmatprep.subr.bf16.mxu1 %v2158_v27  ;;  %v2172_v36 = vcombine.high %v231_v31, %v235_v32  ;;  %v239_v39 = vld [vmem:[%s3410_s3 + $0x100] sm:$0xff]  ;;  %v2171_v42 = vcombine.low %v231_v31, %v235_v32  ;;  %v2174_v43 = vcombine.high %v232_v37, %v236_v38  ;;  %v240_v45 = vld [vmem:[%s3410_s3 + $0x108] sm:$0xff] }
   0xd   :  { %v243_v40 = vld [vmem:[%s3410_s3 + $0x120] sm:$0xff]  ;;  %v244_v46 = vld [vmem:[%s3410_s3 + $0x128] sm:$0xff]  ;;  %v2173_v49 = vcombine.low %v232_v37, %v236_v38 }
   0xe   :  { %v2180_v44 = vcombine.high %v239_v39, %v243_v40  ;;  %v247_v47 = vld [vmem:[%s3410_s3 + $0x140] sm:$0xff]  ;;  %v2179_v50 = vcombine.low %v239_v39, %v243_v40  ;;  %v2182_v51 = vcombine.high %v240_v45, %v244_v46  ;;  %v248_v53 = vld [vmem:[%s3410_s3 + $0x148] sm:$0xff]  ;;  %v2181_v57 = vcombine.low %v240_v45, %v244_v46 }
   0xf   :  { %1788 = vmatpush1.bf16.msra.mxu0 %v2155_v26  ;;  %1870 = vmatpush1.bf16.msra.mxu1 %v2157_v33  ;;  %v251_v48 = vld [vmem:[%s3410_s3 + $0x160] sm:$0xff]  ;;  %v252_v54 = vld [vmem:[%s3410_s3 + $0x168] sm:$0xff] }
  0x10   :  { %1789 = vmatprep.subr.bf16.mxu0 %v2164_v28  ;;  %1871 = vmatprep.subr.bf16.mxu1 %v2166_v35  ;;  %v2188_v52 = vcombine.high %v247_v47, %v251_v48  ;;  %v255_v55 = vld [vmem:[%s3410_s3 + $0x180] sm:$0xff]  ;;  %v2187_v58 = vcombine.low %v247_v47, %v251_v48  ;;  %v2190_v59 = vcombine.high %v248_v53, %v252_v54  ;;  %v256_v61 = vld [vmem:[%s3410_s3 + $0x188] sm:$0xff] }
  0x11   :  { %v259_v56 = vld [vmem:[%s3410_s3 + $0x1a0] sm:$0xff]  ;;  %v260_v62 = vld [vmem:[%s3410_s3 + $0x1a8] sm:$0xff]  ;;  %v2189_v1 = vcombine.low %v248_v53, %v252_v54 }
  0x12   :  { %v2196_v60 = vcombine.high %v255_v55, %v259_v56  ;;  %v263_v63 = vld [vmem:[%s3410_s3 + $0x1c0] sm:$0xff]  ;;  %v2195_v2 = vcombine.low %v255_v55, %v259_v56  ;;  %v2198_v3 = vcombine.high %v256_v61, %v260_v62  ;;  %v264_v5 = vld [vmem:[%s3410_s3 + $0x1c8] sm:$0xff]  ;;  %v2197_v9 = vcombine.low %v256_v61, %v260_v62 }
  0x13   :  { %1790 = vmatpush1.bf16.msra.mxu0 %v2163_v34  ;;  %1872 = vmatpush1.bf16.msra.mxu1 %v2165_v41  ;;  %v267_v0 = vld [vmem:[%s3410_s3 + $0x1e0] sm:$0xff]  ;;  %v268_v6 = vld [vmem:[%s3410_s3 + $0x1e8] sm:$0xff] }
  0x14   :  { %1791 = vmatprep.subr.bf16.mxu0 %v2172_v36  ;;  %1873 = vmatprep.subr.bf16.mxu1 %v2174_v43  ;;  %v2204_v4 = vcombine.high %v263_v63, %v267_v0  ;;  %v271_v7 = vld [vmem:[%s3410_s3 + $0x200] sm:$0xff]  ;;  %v2203_v10 = vcombine.low %v263_v63, %v267_v0  ;;  %v2206_v11 = vcombine.high %v264_v5, %v268_v6  ;;  %v272_v13 = vld [vmem:[%s3410_s3 + $0x208] sm:$0xff] }
  0x15   :  { %v275_v8 = vld [vmem:[%s3410_s3 + $0x220] sm:$0xff]  ;;  %v276_v14 = vld [vmem:[%s3410_s3 + $0x228] sm:$0xff]  ;;  %v2205_v17 = vcombine.low %v264_v5, %v268_v6 }
  0x16   :  { %v2212_v12 = vcombine.high %v271_v7, %v275_v8  ;;  %v279_v15 = vld [vmem:[%s3410_s3 + $0x240] sm:$0xff]  ;;  %v2211_v18 = vcombine.low %v271_v7, %v275_v8  ;;  %v2214_v19 = vcombine.high %v272_v13, %v276_v14  ;;  %v280_v21 = vld [vmem:[%s3410_s3 + $0x248] sm:$0xff]  ;;  %v2213_v23 = vcombine.low %v272_v13, %v276_v14 }
  0x17   :  { %1792 = vmatpush1.bf16.msra.mxu0 %v2171_v42  ;;  %1874 = vmatpush1.bf16.msra.mxu1 %v2173_v49  ;;  %v283_v16 = vld [vmem:[%s3410_s3 + $0x260] sm:$0xff]  ;;  %v284_v22 = vld [vmem:[%s3410_s3 + $0x268] sm:$0xff] }
  0x18   :  { %1793 = vmatprep.subr.bf16.mxu0 %v2180_v44  ;;  %1875 = vmatprep.subr.bf16.mxu1 %v2182_v51  ;;  %v2220_v20 = vcombine.high %v279_v15, %v283_v16  ;;  %v2219_v24 = vcombine.low %v279_v15, %v283_v16  ;;  %v2222_v25 = vcombine.high %v280_v21, %v284_v22  ;;  %v287_v27 = vld [vmem:[%s3410_s3 + $0x280] sm:$0xff]  ;;  %v288_v29 = vld [vmem:[%s3410_s3 + $0x288] sm:$0xff] }
  0x19   :  { %v2221_v26 = vcombine.low %v280_v21, %v284_v22  ;;  %v291_v28 = vld [vmem:[%s3410_s3 + $0x2a0] sm:$0xff]  ;;  %v292_v31 = vld [vmem:[%s3410_s3 + $0x2a8] sm:$0xff] }
  0x1a   :  { %v2228_v30 = vcombine.high %v287_v27, %v291_v28  ;;  %v2227_v32 = vcombine.low %v287_v27, %v291_v28  ;;  %v2229_v33 = vcombine.low %v288_v29, %v292_v31  ;;  %v2230_v34 = vcombine.high %v288_v29, %v292_v31  ;;  %v295_v35 = vld [vmem:[%s3410_s3 + $0x2c0] sm:$0xff]  ;;  %v296_v37 = vld [vmem:[%s3410_s3 + $0x2c8] sm:$0xff] }
  0x1b   :  { %1794 = vmatpush1.bf16.msra.mxu0 %v2179_v50  ;;  %1876 = vmatpush1.bf16.msra.mxu1 %v2181_v57  ;;  %v299_v36 = vld [vmem:[%s3410_s3 + $0x2e0] sm:$0xff]  ;;  %v300_v39 = vld [vmem:[%s3410_s3 + $0x2e8] sm:$0xff] }
  0x1c   :  { %1795 = vmatprep.subr.bf16.mxu0 %v2188_v52  ;;  %1877 = vmatprep.subr.bf16.mxu1 %v2190_v59  ;;  %v2236_v38 = vcombine.high %v295_v35, %v299_v36  ;;  %v2235_v40 = vcombine.low %v295_v35, %v299_v36  ;;  %v2237_v41 = vcombine.low %v296_v37, %v300_v39  ;;  %v303_v43 = vld [vmem:[%s3410_s3 + $0x300] sm:$0xff]  ;;  %v304_v45 = vld [vmem:[%s3410_s3 + $0x308] sm:$0xff] }
  0x1d   :  { %v2238_v42 = vcombine.high %v296_v37, %v300_v39  ;;  %v307_v44 = vld [vmem:[%s3410_s3 + $0x320] sm:$0xff]  ;;  %v308_v47 = vld [vmem:[%s3410_s3 + $0x328] sm:$0xff] }
  0x1e   :  { %v2244_v46 = vcombine.high %v303_v43, %v307_v44  ;;  %v2243_v48 = vcombine.low %v303_v43, %v307_v44  ;;  %v2245_v49 = vcombine.low %v304_v45, %v308_v47  ;;  %v2246_v50 = vcombine.high %v304_v45, %v308_v47  ;;  %v311_v51 = vld [vmem:[%s3410_s3 + $0x340] sm:$0xff]  ;;  %v312_v53 = vld [vmem:[%s3410_s3 + $0x348] sm:$0xff] }
  0x1f   :  { %1796 = vmatpush1.bf16.msra.mxu0 %v2187_v58  ;;  %1878 = vmatpush1.bf16.msra.mxu1 %v2189_v1  ;;  %v315_v52 = vld [vmem:[%s3410_s3 + $0x360] sm:$0xff]  ;;  %v316_v55 = vld [vmem:[%s3410_s3 + $0x368] sm:$0xff] }
  0x20   :  { %1797 = vmatprep.subr.bf16.mxu0 %v2196_v60  ;;  %1879 = vmatprep.subr.bf16.mxu1 %v2198_v3  ;;  %v2252_v54 = vcombine.high %v311_v51, %v315_v52  ;;  %v2251_v56 = vcombine.low %v311_v51, %v315_v52  ;;  %v2253_v57 = vcombine.low %v312_v53, %v316_v55  ;;  %v319_v59 = vld [vmem:[%s3410_s3 + $0x380] sm:$0xff]  ;;  %v320_v61 = vld [vmem:[%s3410_s3 + $0x388] sm:$0xff] }
  0x21   :  { %v2254_v58 = vcombine.high %v312_v53, %v316_v55  ;;  %v323_v60 = vld [vmem:[%s3410_s3 + $0x3a0] sm:$0xff]  ;;  %v324_v63 = vld [vmem:[%s3410_s3 + $0x3a8] sm:$0xff] }
  0x22   :  { %v2260_v62 = vcombine.high %v319_v59, %v323_v60  ;;  %v2259_v0 = vcombine.low %v319_v59, %v323_v60  ;;  %v2261_v1 = vcombine.low %v320_v61, %v324_v63  ;;  %v327_v3 = vld [vmem:[%s3410_s3 + $0x3c0] sm:$0xff]  ;;  %v328_v5 = vld [vmem:[%s3410_s3 + $0x3c8] sm:$0xff] }
  0x23   :  { %1798 = vmatpush1.bf16.msra.mxu0 %v2195_v2  ;;  %1880 = vmatpush1.bf16.msra.mxu1 %v2197_v9  ;;  %v2262_v2 = vcombine.high %v320_v61, %v324_v63  ;;  %v332_v7 = vld [vmem:[%s3410_s3 + $0x3e8] sm:$0xff]  ;;  %v2750_v22 = vld [vmem:[%s3411_s2] sm:$0xf] }
  0x24   :  { %1799 = vmatprep.subr.bf16.mxu0 %v2204_v4  ;;  %1881 = vmatprep.subr.bf16.mxu1 %v2206_v11  ;;  %v331_v4 = vld [vmem:[%s3410_s3 + $0x3e0] sm:$0xff]  ;;  %v2269_v9 = vcombine.low %v328_v5, %v332_v7  ;;  %v2729_v13 = vld [vmem:[%s3410_s3 + $0x408] sm:$0xff] }
  0x25   :  { %v2268_v6 = vcombine.high %v327_v3, %v331_v4  ;;  %v2267_v8 = vcombine.low %v327_v3, %v331_v4  ;;  %v2719_v11 = vld [vmem:[%s3410_s3 + $0x400] sm:$0xff]  ;;  %v2736_v15 = vld [vmem:[%s3410_s3 + $0x428] sm:$0xff] }
  0x26   :  { %v347_v51 = vld [vmem:[%s3410_s3 + $0x460] sm:$0xff]  ;;  %v344_v52 = vld [vmem:[%s3410_s3 + $0x448] sm:$0xff] }
  0x27   :  { %1800 = vmatpush1.bf16.msra.mxu0 %v2203_v10  ;;  %1882 = vmatpush1.bf16.msra.mxu1 %v2205_v17  ;;  %v2270_v10 = vcombine.high %v328_v5, %v332_v7  ;;  %v2277_v17 = vcombine.low %v2729_v13, %v2736_v15  ;;  %v348_v53 = vld [vmem:[%s3410_s3 + $0x468] sm:$0xff]  ;;  %v351_v61 = vld [vmem:[%s3410_s3 + $0x480] sm:$0xff] }
  0x28   :  { %1801 = vmatprep.subr.bf16.mxu0 %v2212_v12  ;;  %1883 = vmatprep.subr.bf16.mxu1 %v2214_v19  ;;  %v2724_v12 = vld [vmem:[%s3410_s3 + $0x420] sm:$0xff]  ;;  %v33_v19 = vlaneseq  ;;  %v2286_v60 = vcombine.high %v344_v52, %v348_v53  ;;  %v352_v63 = vld [vmem:[%s3410_s3 + $0x488] sm:$0xff]  ;;  %v2285_v4 = vcombine.low %v344_v52, %v348_v53 }
  0x29   :  { %v2276_v14 = vcombine.high %v2719_v11, %v2724_v12  ;;  %v2275_v16 = vcombine.low %v2719_v11, %v2724_v12  ;;  %v359_v7 = vld [vmem:[%s3410_s3 + $0x4c0] sm:$0xff] }
  0x2b   :  { %1802 = vmatpush1.bf16.msra.mxu0 %v2211_v18  ;;  %1884 = vmatpush1.bf16.msra.mxu1 %v2213_v23  ;;  %v2278_v18 = vcombine.high %v2729_v13, %v2736_v15  ;;  %v367_v15 = vld [vmem:[%s3410_s3 + $0x500] sm:$0xff] }
  0x2c   :  { %1803 = vmatprep.subr.bf16.mxu0 %v2220_v20  ;;  %1885 = vmatprep.subr.bf16.mxu1 %v2222_v25  ;;  %v2744_v20 = vshrl.u32 %v33_v19, 7 }
  0x2e   :  { %v35_v21 = vsub.s32 0, %v2744_v20  ;;  %v39_v23 = vsub.s32 1, %v2744_v20  ;;  %v47_v25 = vsub.s32 3, %v2744_v20 }
  0x2f   :  { %1804 = vmatpush1.bf16.msra.mxu0 %v2219_v24  ;;  %1886 = vmatpush1.bf16.msra.mxu1 %v2221_v26 }
  0x30   :  { %1805 = vmatprep.subr.bf16.mxu0 %v2228_v30  ;;  %1887 = vmatprep.subr.bf16.mxu1 %v2230_v34  ;;  %v36_v24 = vrot.slane %v2750_v22, %v35_v21  ;;  %v40_v26 = vrot.slane %v2750_v22, %v39_v23  ;;  %v48_v30 = vrot.slane %v2750_v22, %v47_v25 }
  0x33   :  { %1806 = vmatpush1.bf16.msra.mxu0 %v2227_v32  ;;  %1888 = vmatpush1.bf16.msra.mxu1 %v2229_v33 }
  0x34   :  { %1807 = vmatprep.subr.bf16.mxu0 %v2236_v38  ;;  %1889 = vmatprep.subr.bf16.mxu1 %v2238_v42 }
  0x37   :  { %1808 = vmatpush1.bf16.msra.mxu0 %v2235_v40  ;;  %1890 = vmatpush1.bf16.msra.mxu1 %v2237_v41 }
  0x38   :  { %1809 = vmatprep.subr.bf16.mxu0 %v2244_v46  ;;  %1891 = vmatprep.subr.bf16.mxu1 %v2246_v50 }
  0x3b   :  { %1810 = vmatpush1.bf16.msra.mxu0 %v2243_v48  ;;  %1892 = vmatpush1.bf16.msra.mxu1 %v2245_v49  ;;  %v343_v49 = vld [vmem:[%s3410_s3 + $0x440] sm:$0xff] }
  0x3c   :  { %1811 = vmatprep.subr.bf16.mxu0 %v2252_v54  ;;  %1893 = vmatprep.subr.bf16.mxu1 %v2254_v58  ;;  %v2284_v59 = vcombine.high %v343_v49, %v347_v51  ;;  %v2283_v3 = vcombine.low %v343_v49, %v347_v51  ;;  %v43_v51 = vsub.s32 2, %v2744_v20 }
  0x3f   :  { %1812 = vmatpush1.bf16.msra.mxu0 %v2251_v56  ;;  %1894 = vmatpush1.bf16.msra.mxu1 %v2253_v57 }
  0x40   :  { %1813 = vmatprep.subr.bf16.mxu0 %v2260_v62  ;;  %1895 = vmatprep.subr.bf16.mxu1 %v2262_v2  ;;  %v355_v62 = vld [vmem:[%s3410_s3 + $0x4a0] sm:$0xff] }
  0x41   :  { %v2292_v5 = vcombine.high %v351_v61, %v355_v62  ;;  %v2291_v11 = vcombine.low %v351_v61, %v355_v62  ;;  %v44_v62 = vrot.slane %v2750_v22, %v43_v51  ;;  %v412_v22 = vld [vmem:[%s3410_s3 + $0x668] sm:$0xff] }
  0x43   :  { %1814 = vmatpush1.bf16.msra.mxu0 %v2259_v0  ;;  %1896 = vmatpush1.bf16.msra.mxu1 %v2261_v1  ;;  %v356_v0 = vld [vmem:[%s3410_s3 + $0x4a8] sm:$0xff] }
  0x44   :  { %1815 = vmatprep.subr.bf16.mxu0 %v2268_v6  ;;  %1897 = vmatprep.subr.bf16.mxu1 %v2270_v10  ;;  %v2294_v6 = vcombine.high %v352_v63, %v356_v0  ;;  %v364_v10 = vld [vmem:[%s3410_s3 + $0x4e8] sm:$0xff]  ;;  %v2293_v12 = vcombine.low %v352_v63, %v356_v0 }
  0x47   :  { %1816 = vmatpush1.bf16.msra.mxu0 %v2267_v8  ;;  %1898 = vmatpush1.bf16.msra.mxu1 %v2269_v9  ;;  %v363_v8 = vld [vmem:[%s3410_s3 + $0x4e0] sm:$0xff]  ;;  %v360_v9 = vld [vmem:[%s3410_s3 + $0x4c8] sm:$0xff] }
  0x48   :  { %1826 = vmatprep.subr.bf16.mxu0 %v2276_v14  ;;  %1908 = vmatprep.subr.bf16.mxu1 %v2278_v18  ;;  %v2300_v13 = vcombine.high %v359_v7, %v363_v8  ;;  %v2302_v14 = vcombine.high %v360_v9, %v364_v10  ;;  %v372_v18 = vld [vmem:[%s3410_s3 + $0x528] sm:$0xff]  ;;  %v2299_v19 = vcombine.low %v359_v7, %v363_v8 }
  0xdd   :  { %v131_v27 = vpop.f32.mrb[0].mxu0  ;;  %v2763_v35 = vpop.f32.mrb[0].mxu1 }
  0xde   :  { %v132_v28 = vadd.f32 %v131_v27, %v36_v24  ;;  %v133_v29 = vpop.f32.mrb[1].mxu0  ;;  %v174_v37 = vpop.f32.mrb[1].mxu1  ;;  %v2301_v24 = vcombine.low %v360_v9, %v364_v10  ;;  %v2896_v7 = vadd.f32 %v2763_v35, %v44_v62  ;;  %v415_v10 = vld [vmem:[%s3410_s3 + $0x680] sm:$0xff]  ;;  %v420_v35 = vld [vmem:[%s3410_s3 + $0x6a8] sm:$0xff] }
  0xdf   :  { %v134_v31 = vadd.f32 %v133_v29, %v40_v26  ;;  %v135_v32 = vpop.f32.mrb[2].mxu0  ;;  %v175_v39 = vadd.f32 %v174_v37, %v48_v30  ;;  %v176_v40 = vpop.f32.mrb[2].mxu1  ;;  %v379_v29 = vld [vmem:[%s3410_s3 + $0x560] sm:$0xff]  ;;  %v376_v30 = vld [vmem:[%s3410_s3 + $0x548] sm:$0xff] }
  0xe0   :  { %v183_v33 = vmin.f32 %v132_v28, 0.0  ;;  %v136_v34 = vpop.f32.mrb[3].mxu0  ;;  %v177_v42 = vpop.f32.mrb[3].mxu1  ;;  %vm179_vm1 = vcmp.gt.f32.partialorder %v132_v28, 0.0  ;;  %v383_v37 = vld [vmem:[%s3410_s3 + $0x580] sm:$0xff]  ;;  %v388_v40 = vld [vmem:[%s3410_s3 + $0x5a8] sm:$0xff] }
  0xe1   :  { %v184_v36 = vmin.f32 %v134_v31, 0.0  ;;  %v186_v43 = vmin.f32 %v175_v39, 0.0  ;;  %vm180_vm2 = vcmp.gt.f32.partialorder %v134_v31, 0.0  ;;  %vm182_vm3 = vcmp.gt.f32.partialorder %v175_v39, 0.0  ;;  %v456_v62 = vld [vmem:[%s3410_s3 + $0x7c8] sm:$0xff] }
  0xe2   :  { %v187_v38 = vmul.f32 1.442695, %v183_v33  ;;  %vm181_vm4 = vcmp.gt.f32.partialorder %v2896_v7, 0.0 }
  0xe3   :  { %v189_v41 = vmul.f32 1.442695, %v184_v36  ;;  %v193_v44 = vmul.f32 1.442695, %v186_v43 }
  0xe4   :  { %2440 = vpow2.f32 %v187_v38  ;;  %v387_v38 = vld [vmem:[%s3410_s3 + $0x5a0] sm:$0xff] }
  0xe5   :  { %2442 = vpow2.f32 %v189_v41  ;;  %v2324_v43 = vcombine.high %v383_v37, %v387_v38  ;;  %v2323_v49 = vcombine.low %v383_v37, %v387_v38 }
  0xe6   :  { %2444 = vpow2.f32 %v193_v44 }
  0xee   :  { %v2441_v45 = vpop.eup %2440 }
  0xef   :  { %v2443_v46 = vpop.eup %2442  ;;  %v2143_v47 = vadd.f32 -1.0, %v2441_v45  ;;  %v391_v45 = vld [vmem:[%s3410_s3 + $0x5c0] sm:$0xff] }
  0xf0   :  { %v2144_v48 = vadd.f32 -1.0, %v2443_v46  ;;  %v2445_v54 = vpop.eup %2444  ;;  %v395_v46 = vld [vmem:[%s3410_s3 + $0x5e0] sm:$0xff] }
  0xf1   :  { %v199_v50 = vsel %vm179_vm1, %v132_v28, %v2143_v47  ;;  %v2146_v57 = vadd.f32 -1.0, %v2445_v54  ;;  %v375_v28 = vld [vmem:[%s3410_s3 + $0x540] sm:$0xff]  ;;  %v392_v47 = vld [vmem:[%s3410_s3 + $0x5c8] sm:$0xff]  ;;  %v2332_v52 = vcombine.high %v391_v45, %v395_v46 }
  0xf2   :  { %v200_v55 = vsel %vm180_vm2, %v134_v31, %v2144_v48  ;;  %v2779_v58 = vpack.c.bf16 %v199_v50, %v199_v50  ;;  %v380_v31 = vld [vmem:[%s3410_s3 + $0x568] sm:$0xff]  ;;  %v2316_v34 = vcombine.high %v375_v28, %v379_v29  ;;  %v2315_v41 = vcombine.low %v375_v28, %v379_v29  ;;  %v399_v54 = vld [vmem:[%s3410_s3 + $0x600] sm:$0xff] }
  0xf3   :  { %v2777_v56 = vpack.c.bf16 %v200_v55, %v200_v55  ;;  %v202_v1 = vsel %vm182_vm3, %v175_v39, %v2146_v57  ;;  %v2318_v36 = vcombine.high %v376_v30, %v380_v31  ;;  %v384_v39 = vld [vmem:[%s3410_s3 + $0x588] sm:$0xff]  ;;  %v2317_v42 = vcombine.low %v376_v30, %v380_v31  ;;  %v403_v55 = vld [vmem:[%s3410_s3 + $0x620] sm:$0xff] }
  0xf4   :  { %v2797_v2 = vpack.c.bf16 %v202_v1, %v202_v1  ;;  %v2326_v44 = vcombine.high %v384_v39, %v388_v40  ;;  %v396_v48 = vld [vmem:[%s3410_s3 + $0x5e8] sm:$0xff]  ;;  %v2325_v50 = vcombine.low %v384_v39, %v388_v40  ;;  %v2340_v63 = vcombine.high %v399_v54, %v403_v55  ;;  %v407_v1 = vld [vmem:[%s3410_s3 + $0x640] sm:$0xff] }
  0xf5   :  { %1817 = vmatprep.mubr.bf16.mxu0 %v2777_v56  ;;  %1899 = vmatprep.mubr.bf16.mxu1 %v2777_v56  ;;  %v2334_v53 = vcombine.high %v392_v47, %v396_v48  ;;  %v400_v57 = vld [vmem:[%s3410_s3 + $0x608] sm:$0xff]  ;;  %v2333_v61 = vcombine.low %v392_v47, %v396_v48 }
  0xf6   :  { %1818 = vmatmul.mubr.bf16.vlgmr.msra.gmra.mrb[4].mxu0 %v2779_v58  ;;  %1900 = vmatmul.mubr.bf16.vlgmr.msra.gmra.mrb[4].mxu1 %v2779_v58 }
  0xf7   :  { %1827 = vmatpush1.bf16.msra.mxu0 %v2275_v16  ;;  %1909 = vmatpush1.bf16.msra.mxu1 %v2277_v17  ;;  %v371_v16 = vld [vmem:[%s3410_s3 + $0x520] sm:$0xff]  ;;  %v368_v17 = vld [vmem:[%s3410_s3 + $0x508] sm:$0xff] }
  0xf8   :  { %1828 = vmatprep.subr.bf16.mxu0 %v2284_v59  ;;  %1910 = vmatprep.subr.bf16.mxu1 %v2286_v60  ;;  %v2308_v26 = vcombine.high %v367_v15, %v371_v16  ;;  %v2310_v27 = vcombine.high %v368_v17, %v372_v18  ;;  %v2307_v32 = vcombine.low %v367_v15, %v371_v16  ;;  %v404_v59 = vld [vmem:[%s3410_s3 + $0x628] sm:$0xff]  ;;  %v185_v15 = vmin.f32 %v2896_v7, 0.0 }
  0xf9   :  { %1858 = vmatprep.mubr.bf16.mxu0 %v2797_v2  ;;  %1940 = vmatprep.mubr.bf16.mxu1 %v2797_v2  ;;  %v2309_v33 = vcombine.low %v368_v17, %v372_v18  ;;  %v2331_v60 = vcombine.low %v391_v45, %v395_v46  ;;  %v2342_v0 = vcombine.high %v400_v57, %v404_v59  ;;  %v423_v18 = vld [vmem:[%s3410_s3 + $0x6c0] sm:$0xff] }
  0xfa   :  { %v191_v29 = vmul.f32 1.442695, %v185_v15  ;;  %v217_v15 = vld [vmem:[%s3410_s3 + $0x50] sm:$0xff] }
  0xfb   :  { %1829 = vmatpush1.bf16.msra.mxu0 %v2283_v3  ;;  %1911 = vmatpush1.bf16.msra.mxu1 %v2285_v4  ;;  %v411_v3 = vld [vmem:[%s3410_s3 + $0x660] sm:$0xff]  ;;  %v408_v4 = vld [vmem:[%s3410_s3 + $0x648] sm:$0xff] }
  0xfc   :  { %1830 = vmatprep.subr.bf16.mxu0 %v2292_v5  ;;  %1912 = vmatprep.subr.bf16.mxu1 %v2294_v6  ;;  %v2339_v5 = vcombine.low %v399_v54, %v403_v55  ;;  %v2341_v6 = vcombine.low %v400_v57, %v404_v59  ;;  %v2348_v8 = vcombine.high %v407_v1, %v411_v3  ;;  %2446 = vpow2.f32 %v191_v29  ;;  %v229_v29 = vld [vmem:[%s3410_s3 + $0xb0] sm:$0xff] }
  0xfd   :  { %v2350_v9 = vcombine.high %v408_v4, %v412_v22 }
  0xff   :  { %1831 = vmatpush1.bf16.msra.mxu0 %v2291_v11  ;;  %1913 = vmatpush1.bf16.msra.mxu1 %v2293_v12  ;;  %v419_v11 = vld [vmem:[%s3410_s3 + $0x6a0] sm:$0xff]  ;;  %v416_v12 = vld [vmem:[%s3410_s3 + $0x688] sm:$0xff] }
 0x100   :  { %1832 = vmatprep.subr.bf16.mxu0 %v2300_v13  ;;  %1914 = vmatprep.subr.bf16.mxu1 %v2302_v14  ;;  %v2347_v13 = vcombine.low %v407_v1, %v411_v3  ;;  %v2349_v14 = vcombine.low %v408_v4, %v412_v22  ;;  %v2356_v16 = vcombine.high %v415_v10, %v419_v11 }
 0x101   :  { %v2358_v17 = vcombine.high %v416_v12, %v420_v35  ;;  %v2357_v28 = vcombine.low %v416_v12, %v420_v35 }
 0x103   :  { %1833 = vmatpush1.bf16.msra.mxu0 %v2299_v19  ;;  %1915 = vmatpush1.bf16.msra.mxu1 %v2301_v24  ;;  %v427_v19 = vld [vmem:[%s3410_s3 + $0x6e0] sm:$0xff]  ;;  %v424_v24 = vld [vmem:[%s3410_s3 + $0x6c8] sm:$0xff] }
 0x104   :  { %1834 = vmatprep.subr.bf16.mxu0 %v2308_v26  ;;  %1916 = vmatprep.subr.bf16.mxu1 %v2310_v27  ;;  %v428_v26 = vld [vmem:[%s3410_s3 + $0x6e8] sm:$0xff]  ;;  %v2355_v27 = vcombine.low %v415_v10, %v419_v11  ;;  %v2364_v30 = vcombine.high %v423_v18, %v427_v19  ;;  %v2363_v37 = vcombine.low %v423_v18, %v427_v19  ;;  %v214_v10 = vld [vmem:[%s3410_s3 + $0x38] sm:$0xff] }
 0x105   :  { %v2366_v31 = vcombine.high %v424_v24, %v428_v26  ;;  %v2365_v38 = vcombine.low %v424_v24, %v428_v26  ;;  %v222_v18 = vld [vmem:[%s3410_s3 + $0x78] sm:$0xff] }
 0x107   :  { %1835 = vmatpush1.bf16.msra.mxu0 %v2307_v32  ;;  %1917 = vmatpush1.bf16.msra.mxu1 %v2309_v33  ;;  %v431_v32 = vld [vmem:[%s3410_s3 + $0x700] sm:$0xff] }
 0x108   :  { %1836 = vmatprep.subr.bf16.mxu0 %v2316_v34  ;;  %1918 = vmatprep.subr.bf16.mxu1 %v2318_v36  ;;  %v435_v33 = vld [vmem:[%s3410_s3 + $0x720] sm:$0xff]  ;;  %v432_v34 = vld [vmem:[%s3410_s3 + $0x708] sm:$0xff] }
 0x109   :  { %v436_v36 = vld [vmem:[%s3410_s3 + $0x728] sm:$0xff]  ;;  %v2372_v39 = vcombine.high %v431_v32, %v435_v33  ;;  %v2371_v45 = vcombine.low %v431_v32, %v435_v33 }
 0x10a   :  { %v2374_v40 = vcombine.high %v432_v34, %v436_v36  ;;  %v2373_v46 = vcombine.low %v432_v34, %v436_v36 }
 0x10b   :  { %1837 = vmatpush1.bf16.msra.mxu0 %v2315_v41  ;;  %1919 = vmatpush1.bf16.msra.mxu1 %v2317_v42  ;;  %v439_v41 = vld [vmem:[%s3410_s3 + $0x740] sm:$0xff] }
 0x10c   :  { %1838 = vmatprep.subr.bf16.mxu0 %v2324_v43  ;;  %1920 = vmatprep.subr.bf16.mxu1 %v2326_v44  ;;  %v443_v42 = vld [vmem:[%s3410_s3 + $0x760] sm:$0xff]  ;;  %v440_v43 = vld [vmem:[%s3410_s3 + $0x748] sm:$0xff] }
 0x10d   :  { %v444_v44 = vld [vmem:[%s3410_s3 + $0x768] sm:$0xff]  ;;  %v2380_v47 = vcombine.high %v439_v41, %v443_v42  ;;  %v2379_v54 = vcombine.low %v439_v41, %v443_v42 }
 0x10e   :  { %v2382_v48 = vcombine.high %v440_v43, %v444_v44  ;;  %v2381_v55 = vcombine.low %v440_v43, %v444_v44  ;;  %v241_v44 = vld [vmem:[%s3410_s3 + $0x110] sm:$0xff] }
 0x10f   :  { %1839 = vmatpush1.bf16.msra.mxu0 %v2323_v49  ;;  %1921 = vmatpush1.bf16.msra.mxu1 %v2325_v50  ;;  %v447_v49 = vld [vmem:[%s3410_s3 + $0x780] sm:$0xff] }
 0x110   :  { %1840 = vmatprep.subr.bf16.mxu0 %v2332_v52  ;;  %1922 = vmatprep.subr.bf16.mxu1 %v2334_v53  ;;  %v451_v50 = vld [vmem:[%s3410_s3 + $0x7a0] sm:$0xff]  ;;  %v448_v52 = vld [vmem:[%s3410_s3 + $0x788] sm:$0xff] }
 0x111   :  { %v452_v53 = vld [vmem:[%s3410_s3 + $0x7a8] sm:$0xff]  ;;  %v2388_v57 = vcombine.high %v447_v49, %v451_v50  ;;  %v2387_v1 = vcombine.low %v447_v49, %v451_v50 }
 0x112   :  { %v2390_v59 = vcombine.high %v448_v52, %v452_v53  ;;  %v2389_v3 = vcombine.low %v448_v52, %v452_v53  ;;  %v249_v53 = vld [vmem:[%s3410_s3 + $0x150] sm:$0xff] }
 0x113   :  { %1841 = vmatpush1.bf16.msra.mxu0 %v2331_v60  ;;  %1923 = vmatpush1.bf16.msra.mxu1 %v2333_v61  ;;  %v455_v60 = vld [vmem:[%s3410_s3 + $0x7c0] sm:$0xff] }
 0x114   :  { %1842 = vmatprep.subr.bf16.mxu0 %v2340_v63  ;;  %1924 = vmatprep.subr.bf16.mxu1 %v2342_v0  ;;  %v459_v61 = vld [vmem:[%s3410_s3 + $0x7e0] sm:$0xff]  ;;  %v460_v63 = vld [vmem:[%s3410_s3 + $0x7e8] sm:$0xff]  ;;  %v2447_v0 = vpop.eup %2446 }
 0x115   :  { %v2396_v4 = vcombine.high %v455_v60, %v459_v61  ;;  %v2398_v22 = vcombine.high %v456_v62, %v460_v63  ;;  %v2395_v11 = vcombine.low %v455_v60, %v459_v61  ;;  %v2397_v12 = vcombine.low %v456_v62, %v460_v63  ;;  %v257_v63 = vld [vmem:[%s3410_s3 + $0x190] sm:$0xff] }
 0x117   :  { %1843 = vmatpush1.bf16.msra.mxu0 %v2339_v5  ;;  %1925 = vmatpush1.bf16.msra.mxu1 %v2341_v6  ;;  %v209_v5 = vld [vmem:[%s3410_s3 + $0x10] sm:$0xff]  ;;  %v2145_v6 = vadd.f32 -1.0, %v2447_v0 }
 0x118   :  { %1844 = vmatprep.subr.bf16.mxu0 %v2348_v8  ;;  %1926 = vmatprep.subr.bf16.mxu1 %v2350_v9  ;;  %v213_v8 = vld [vmem:[%s3410_s3 + $0x30] sm:$0xff]  ;;  %v210_v9 = vld [vmem:[%s3410_s3 + $0x18] sm:$0xff] }
 0x119   :  { %v2152_v35 = vcombine.high %v209_v5, %v213_v8  ;;  %v2151_v19 = vcombine.low %v209_v5, %v213_v8  ;;  %v2153_v24 = vcombine.low %v210_v9, %v214_v10  ;;  %v261_v0 = vld [vmem:[%s3410_s3 + $0x1b0] sm:$0xff] }
 0x11a   :  { %v2200_v5 = vcombine.high %v257_v63, %v261_v0  ;;  %v265_v8 = vld [vmem:[%s3410_s3 + $0x1d0] sm:$0xff] }
 0x11b   :  { %1845 = vmatpush1.bf16.msra.mxu0 %v2347_v13  ;;  %1927 = vmatpush1.bf16.msra.mxu1 %v2349_v14  ;;  %v2154_v13 = vcombine.high %v210_v9, %v214_v10  ;;  %v201_v14 = vsel %vm181_vm4, %v2896_v7, %v2145_v6  ;;  %v269_v9 = vld [vmem:[%s3410_s3 + $0x1f0] sm:$0xff]  ;;  %v266_v10 = vld [vmem:[%s3410_s3 + $0x1d8] sm:$0xff] }
 0x11c   :  { %1846 = vmatprep.subr.bf16.mxu0 %v2356_v16  ;;  %1928 = vmatprep.subr.bf16.mxu1 %v2358_v17  ;;  %v221_v16 = vld [vmem:[%s3410_s3 + $0x70] sm:$0xff]  ;;  %v218_v17 = vld [vmem:[%s3410_s3 + $0x58] sm:$0xff]  ;;  %v2997_v7 = vpack.c.bf16 %v201_v14, %v201_v14 }
 0x11d   :  { %v2160_v26 = vcombine.high %v217_v15, %v221_v16  ;;  %v2159_v32 = vcombine.low %v217_v15, %v221_v16  ;;  %v2161_v33 = vcombine.low %v218_v17, %v222_v18  ;;  %v273_v15 = vld [vmem:[%s3410_s3 + $0x210] sm:$0xff] }
 0x11e   :  { %v277_v16 = vld [vmem:[%s3410_s3 + $0x230] sm:$0xff] }
 0x11f   :  { %1847 = vmatpush1.bf16.msra.mxu0 %v2355_v27  ;;  %1929 = vmatpush1.bf16.msra.mxu1 %v2357_v28  ;;  %v2162_v27 = vcombine.high %v218_v17, %v222_v18  ;;  %v225_v28 = vld [vmem:[%s3410_s3 + $0x90] sm:$0xff]  ;;  %v274_v17 = vld [vmem:[%s3410_s3 + $0x218] sm:$0xff] }
 0x120   :  { %1848 = vmatprep.subr.bf16.mxu0 %v2364_v30  ;;  %1930 = vmatprep.subr.bf16.mxu1 %v2366_v31  ;;  %v226_v30 = vld [vmem:[%s3410_s3 + $0x98] sm:$0xff]  ;;  %v2168_v34 = vcombine.high %v225_v28, %v229_v29 }
 0x121   :  { %v230_v31 = vld [vmem:[%s3410_s3 + $0xb8] sm:$0xff] }
 0x122   :  { %v2170_v36 = vcombine.high %v226_v30, %v230_v31  ;;  %v2169_v41 = vcombine.low %v226_v30, %v230_v31  ;;  %v278_v18 = vld [vmem:[%s3410_s3 + $0x238] sm:$0xff] }
 0x123   :  { %1849 = vmatpush1.bf16.msra.mxu0 %v2363_v37  ;;  %1931 = vmatpush1.bf16.msra.mxu1 %v2365_v38  ;;  %v233_v37 = vld [vmem:[%s3410_s3 + $0xd0] sm:$0xff]  ;;  %v282_v30 = vld [vmem:[%s3410_s3 + $0x258] sm:$0xff] }
 0x124   :  { %1850 = vmatprep.subr.bf16.mxu0 %v2372_v39  ;;  %1932 = vmatprep.subr.bf16.mxu1 %v2374_v40  ;;  %v237_v38 = vld [vmem:[%s3410_s3 + $0xf0] sm:$0xff]  ;;  %v234_v39 = vld [vmem:[%s3410_s3 + $0xd8] sm:$0xff]  ;;  %v2167_v40 = vcombine.low %v225_v28, %v229_v29 }
 0x125   :  { %v2176_v42 = vcombine.high %v233_v37, %v237_v38  ;;  %v281_v28 = vld [vmem:[%s3410_s3 + $0x250] sm:$0xff]  ;;  %v286_v31 = vld [vmem:[%s3410_s3 + $0x278] sm:$0xff] }
 0x126   :  { %v285_v29 = vld [vmem:[%s3410_s3 + $0x270] sm:$0xff] }
 0x127   :  { %1851 = vmatpush1.bf16.msra.mxu0 %v2371_v45  ;;  %1933 = vmatpush1.bf16.msra.mxu1 %v2373_v46  ;;  %v245_v45 = vld [vmem:[%s3410_s3 + $0x130] sm:$0xff]  ;;  %v242_v46 = vld [vmem:[%s3410_s3 + $0x118] sm:$0xff] }
 0x128   :  { %1852 = vmatprep.subr.bf16.mxu0 %v2380_v47  ;;  %1934 = vmatprep.subr.bf16.mxu1 %v2382_v48  ;;  %v246_v47 = vld [vmem:[%s3410_s3 + $0x138] sm:$0xff]  ;;  %v2175_v48 = vcombine.low %v233_v37, %v237_v38  ;;  %v2184_v50 = vcombine.high %v241_v44, %v245_v45  ;;  %v289_v37 = vld [vmem:[%s3410_s3 + $0x290] sm:$0xff] }
 0x129   :  { %v2186_v52 = vcombine.high %v242_v46, %v246_v47  ;;  %v2185_v60 = vcombine.low %v242_v46, %v246_v47  ;;  %v293_v38 = vld [vmem:[%s3410_s3 + $0x2b0] sm:$0xff]  ;;  %v298_v46 = vld [vmem:[%s3410_s3 + $0x2d8] sm:$0xff] }
 0x12a   :  { %v302_v47 = vld [vmem:[%s3410_s3 + $0x2f8] sm:$0xff] }
 0x12b   :  { %1853 = vmatpush1.bf16.msra.mxu0 %v2379_v54  ;;  %1935 = vmatpush1.bf16.msra.mxu1 %v2381_v55  ;;  %v253_v54 = vld [vmem:[%s3410_s3 + $0x170] sm:$0xff]  ;;  %v250_v55 = vld [vmem:[%s3410_s3 + $0x158] sm:$0xff] }
 0x12c   :  { %1854 = vmatprep.subr.bf16.mxu0 %v2388_v57  ;;  %1936 = vmatprep.subr.bf16.mxu1 %v2390_v59  ;;  %v254_v57 = vld [vmem:[%s3410_s3 + $0x178] sm:$0xff]  ;;  %v2183_v59 = vcombine.low %v241_v44, %v245_v45  ;;  %v2192_v61 = vcombine.high %v249_v53, %v253_v54  ;;  %v297_v44 = vld [vmem:[%s3410_s3 + $0x2d0] sm:$0xff] }
 0x12d   :  { %v2194_v62 = vcombine.high %v250_v55, %v254_v57  ;;  %v301_v45 = vld [vmem:[%s3410_s3 + $0x2f0] sm:$0xff] }
 0x12f   :  { %1855 = vmatpush1.bf16.msra.mxu0 %v2387_v1  ;;  %1937 = vmatpush1.bf16.msra.mxu1 %v2389_v3  ;;  %v258_v1 = vld [vmem:[%s3410_s3 + $0x198] sm:$0xff] }
 0x130   :  { %1856 = vmatprep.subr.bf16.mxu0 %v2396_v4  ;;  %1938 = vmatprep.subr.bf16.mxu1 %v2398_v22  ;;  %v262_v3 = vld [vmem:[%s3410_s3 + $0x1b8] sm:$0xff]  ;;  %v2191_v4 = vcombine.low %v249_v53, %v253_v54  ;;  %v2193_v22 = vcombine.low %v250_v55, %v254_v57  ;;  %v305_v53 = vld [vmem:[%s3410_s3 + $0x310] sm:$0xff] }
 0x131   :  { %v2202_v6 = vcombine.high %v258_v1, %v262_v3  ;;  %v309_v54 = vld [vmem:[%s3410_s3 + $0x330] sm:$0xff]  ;;  %v306_v55 = vld [vmem:[%s3410_s3 + $0x318] sm:$0xff] }
 0x132   :  { %v310_v57 = vld [vmem:[%s3410_s3 + $0x338] sm:$0xff] }
 0x133   :  { %1857 = vmatpush1.bf16.msra.mxu0 %v2395_v11  ;;  %1939 = vmatpush1.bf16.msra.mxu1 %v2397_v12  ;;  %v270_v11 = vld [vmem:[%s3410_s3 + $0x1f8] sm:$0xff]  ;;  %v2199_v12 = vcombine.low %v257_v63, %v261_v0  ;;  %v313_v63 = vld [vmem:[%s3410_s3 + $0x350] sm:$0xff] }
 0x134   :  { %1949 = vmatprep.subr.bf16.mxu0 %v2152_v35  ;;  %2031 = vmatprep.subr.bf16.mxu1 %v2154_v13  ;;  %v2201_v35 = vcombine.low %v258_v1, %v262_v3  ;;  %v2208_v13 = vcombine.high %v265_v8, %v269_v9  ;;  %v2210_v14 = vcombine.high %v266_v10, %v270_v11  ;;  %v317_v0 = vld [vmem:[%s3410_s3 + $0x370] sm:$0xff]  ;;  %v314_v1 = vld [vmem:[%s3410_s3 + $0x358] sm:$0xff] }
 0x135   :  { %v318_v3 = vld [vmem:[%s3410_s3 + $0x378] sm:$0xff] }
 0x136   :  { %1859 = vmatmul.mubr.bf16.vlgmr.msra.gmra.mrb[4].mxu0 %v2997_v7  ;;  %1941 = vmatmul.mubr.bf16.vlgmr.msra.gmra.mrb[4].mxu1 %v2997_v7 }
 0x137   :  { %1950 = vmatpush1.bf16.msra.mxu0 %v2151_v19  ;;  %1981 = vmatprep.mubr.bf16.mxu0 %v2777_v56  ;;  %v2207_v19 = vcombine.low %v265_v8, %v269_v9  ;;  %v321_v8 = vld [vmem:[%s3410_s3 + $0x390] sm:$0xff] }
 0x138   :  { %2032 = vmatpush1.bf16.msra.mxu1 %v2153_v24  ;;  %2063 = vmatprep.mubr.bf16.mxu1 %v2777_v56  ;;  %v238_v56 = vld [vmem:[%s3410_s3 + $0xf8] sm:$0xff]  ;;  %v2209_v24 = vcombine.low %v266_v10, %v270_v11  ;;  %v325_v9 = vld [vmem:[%s3410_s3 + $0x3b0] sm:$0xff] }
 0x139   :  { %1951 = vmatprep.subr.bf16.mxu0 %v2160_v26  ;;  %2033 = vmatprep.subr.bf16.mxu1 %v2162_v27  ;;  %v2178_v43 = vcombine.high %v234_v39, %v238_v56  ;;  %v2177_v49 = vcombine.low %v234_v39, %v238_v56  ;;  %v2216_v26 = vcombine.high %v273_v15, %v277_v16  ;;  %v290_v39 = vld [vmem:[%s3410_s3 + $0x298] sm:$0xff] }
 0x13a   :  { %v2218_v27 = vcombine.high %v274_v17, %v278_v18  ;;  %v294_v56 = vld [vmem:[%s3410_s3 + $0x2b8] sm:$0xff] }
 0x13b   :  { %1952 = vmatpush1.bf16.msra.mxu0 %v2159_v32  ;;  %v2215_v32 = vcombine.low %v273_v15, %v277_v16  ;;  %v322_v10 = vld [vmem:[%s3410_s3 + $0x398] sm:$0xff]  ;;  %v329_v15 = vld [vmem:[%s3410_s3 + $0x3d0] sm:$0xff] }
 0x13c   :  { %2034 = vmatpush1.bf16.msra.mxu1 %v2161_v33  ;;  %1953 = vmatprep.subr.bf16.mxu0 %v2168_v34  ;;  %v2217_v33 = vcombine.low %v274_v17, %v278_v18  ;;  %v2224_v34 = vcombine.high %v281_v28, %v285_v29  ;;  %v326_v11 = vld [vmem:[%s3410_s3 + $0x3b8] sm:$0xff]  ;;  %v333_v16 = vld [vmem:[%s3410_s3 + $0x3f0] sm:$0xff] }
 0x13d   :  { %2035 = vmatprep.subr.bf16.mxu1 %v2170_v36  ;;  %v2226_v36 = vcombine.high %v282_v30, %v286_v31  ;;  %v330_v17 = vld [vmem:[%s3410_s3 + $0x3d8] sm:$0xff] }
 0x13e   :  { %v334_v18 = vld [vmem:[%s3410_s3 + $0x3f8] sm:$0xff] }
 0x13f   :  { %1954 = vmatpush1.bf16.msra.mxu0 %v2167_v40  ;;  %v2223_v40 = vcombine.low %v281_v28, %v285_v29  ;;  %v337_v28 = vld [vmem:[%s3410_s3 + $0x410] sm:$0xff] }
 0x140   :  { %2036 = vmatpush1.bf16.msra.mxu1 %v2169_v41  ;;  %1955 = vmatprep.subr.bf16.mxu0 %v2176_v42  ;;  %v2225_v41 = vcombine.low %v282_v30, %v286_v31  ;;  %v2232_v42 = vcombine.high %v289_v37, %v293_v38  ;;  %v341_v29 = vld [vmem:[%s3410_s3 + $0x430] sm:$0xff]  ;;  %v338_v30 = vld [vmem:[%s3410_s3 + $0x418] sm:$0xff] }
 0x141   :  { %2037 = vmatprep.subr.bf16.mxu1 %v2178_v43  ;;  %v2234_v43 = vcombine.high %v290_v39, %v294_v56  ;;  %v342_v31 = vld [vmem:[%s3410_s3 + $0x438] sm:$0xff] }
 0x143   :  { %1956 = vmatpush1.bf16.msra.mxu0 %v2175_v48  ;;  %v2231_v48 = vcombine.low %v289_v37, %v293_v38  ;;  %v345_v37 = vld [vmem:[%s3410_s3 + $0x450] sm:$0xff] }
 0x144   :  { %2038 = vmatpush1.bf16.msra.mxu1 %v2177_v49  ;;  %1957 = vmatprep.subr.bf16.mxu0 %v2184_v50  ;;  %v2233_v49 = vcombine.low %v290_v39, %v294_v56  ;;  %v2240_v50 = vcombine.high %v297_v44, %v301_v45  ;;  %v349_v38 = vld [vmem:[%s3410_s3 + $0x470] sm:$0xff]  ;;  %v2279_v39 = vcombine.low %v337_v28, %v341_v29  ;;  %v346_v56 = vld [vmem:[%s3410_s3 + $0x458] sm:$0xff] }
 0x145   :  { %2039 = vmatprep.subr.bf16.mxu1 %v2186_v52  ;;  %v2242_v52 = vcombine.high %v298_v46, %v302_v47 }
 0x147   :  { %1958 = vmatpush1.bf16.msra.mxu0 %v2183_v59  ;;  %v2239_v59 = vcombine.low %v297_v44, %v301_v45  ;;  %v357_v44 = vld [vmem:[%s3410_s3 + $0x4b0] sm:$0xff] }
 0x148   :  { %2040 = vmatpush1.bf16.msra.mxu1 %v2185_v60  ;;  %1959 = vmatprep.subr.bf16.mxu0 %v2192_v61  ;;  %v2241_v60 = vcombine.low %v298_v46, %v302_v47  ;;  %v2248_v61 = vcombine.high %v305_v53, %v309_v54  ;;  %v354_v46 = vld [vmem:[%s3410_s3 + $0x498] sm:$0xff] }
 0x149   :  { %2041 = vmatprep.subr.bf16.mxu1 %v2194_v62  ;;  %v2250_v62 = vcombine.high %v306_v55, %v310_v57  ;;  %v358_v47 = vld [vmem:[%s3410_s3 + $0x4b8] sm:$0xff] }
 0x14b   :  { %1960 = vmatpush1.bf16.msra.mxu0 %v2191_v4  ;;  %v2247_v4 = vcombine.low %v305_v53, %v309_v54  ;;  %v361_v53 = vld [vmem:[%s3410_s3 + $0x4d0] sm:$0xff] }
 0x14c   :  { %2042 = vmatpush1.bf16.msra.mxu1 %v2193_v22  ;;  %1961 = vmatprep.subr.bf16.mxu0 %v2200_v5  ;;  %v2249_v22 = vcombine.low %v306_v55, %v310_v57  ;;  %v2256_v5 = vcombine.high %v313_v63, %v317_v0  ;;  %v365_v54 = vld [vmem:[%s3410_s3 + $0x4f0] sm:$0xff]  ;;  %v366_v55 = vld [vmem:[%s3410_s3 + $0x4f8] sm:$0xff]  ;;  %v2297_v57 = vcombine.low %v354_v46, %v358_v47 }
 0x14d   :  { %2043 = vmatprep.subr.bf16.mxu1 %v2202_v6  ;;  %v2258_v6 = vcombine.high %v314_v1, %v318_v3 }
 0x14f   :  { %1962 = vmatpush1.bf16.msra.mxu0 %v2199_v12  ;;  %v2255_v12 = vcombine.low %v313_v63, %v317_v0  ;;  %v370_v63 = vld [vmem:[%s3410_s3 + $0x518] sm:$0xff] }
 0x150   :  { %2044 = vmatpush1.bf16.msra.mxu1 %v2201_v35  ;;  %1963 = vmatprep.subr.bf16.mxu0 %v2208_v13  ;;  %v2257_v35 = vcombine.low %v314_v1, %v318_v3  ;;  %v2264_v13 = vcombine.high %v321_v8, %v325_v9  ;;  %v374_v0 = vld [vmem:[%s3410_s3 + $0x538] sm:$0xff]  ;;  %v2303_v1 = vcombine.low %v361_v53, %v365_v54 }
 0x151   :  { %2045 = vmatprep.subr.bf16.mxu1 %v2210_v14  ;;  %v2266_v14 = vcombine.high %v322_v10, %v326_v11 }
 0x153   :  { %1964 = vmatpush1.bf16.msra.mxu0 %v2207_v19  ;;  %v2263_v19 = vcombine.low %v321_v8, %v325_v9  ;;  %v378_v8 = vld [vmem:[%s3410_s3 + $0x558] sm:$0xff] }
 0x154   :  { %2046 = vmatpush1.bf16.msra.mxu1 %v2209_v24  ;;  %1965 = vmatprep.subr.bf16.mxu0 %v2216_v26  ;;  %v2265_v24 = vcombine.low %v322_v10, %v326_v11  ;;  %v2272_v26 = vcombine.high %v329_v15, %v333_v16  ;;  %v382_v9 = vld [vmem:[%s3410_s3 + $0x578] sm:$0xff]  ;;  %v2313_v11 = vcombine.low %v370_v63, %v374_v0 }
 0x155   :  { %2047 = vmatprep.subr.bf16.mxu1 %v2218_v27  ;;  %v2274_v27 = vcombine.high %v330_v17, %v334_v18 }
 0x157   :  { %1966 = vmatpush1.bf16.msra.mxu0 %v2215_v32  ;;  %v2271_v32 = vcombine.low %v329_v15, %v333_v16  ;;  %v386_v15 = vld [vmem:[%s3410_s3 + $0x598] sm:$0xff] }
 0x158   :  { %2048 = vmatpush1.bf16.msra.mxu1 %v2217_v33  ;;  %1967 = vmatprep.subr.bf16.mxu0 %v2224_v34  ;;  %v2273_v33 = vcombine.low %v330_v17, %v334_v18  ;;  %v2280_v34 = vcombine.high %v337_v28, %v341_v29  ;;  %v390_v16 = vld [vmem:[%s3410_s3 + $0x5b8] sm:$0xff]  ;;  %v2321_v18 = vcombine.low %v378_v8, %v382_v9 }
 0x159   :  { %2049 = vmatprep.subr.bf16.mxu1 %v2226_v36  ;;  %v2282_v36 = vcombine.high %v338_v30, %v342_v31  ;;  %v394_v28 = vld [vmem:[%s3410_s3 + $0x5d8] sm:$0xff] }
 0x15a   :  { %v398_v29 = vld [vmem:[%s3410_s3 + $0x5f8] sm:$0xff] }
 0x15b   :  { %1968 = vmatpush1.bf16.msra.mxu0 %v2223_v40  ;;  %v350_v40 = vld [vmem:[%s3410_s3 + $0x478] sm:$0xff] }
 0x15c   :  { %2050 = vmatpush1.bf16.msra.mxu1 %v2225_v41  ;;  %1969 = vmatprep.subr.bf16.mxu0 %v2232_v42  ;;  %v2281_v41 = vcombine.low %v338_v30, %v342_v31  ;;  %v2288_v42 = vcombine.high %v345_v37, %v349_v38  ;;  %v2290_v45 = vcombine.high %v346_v56, %v350_v40 }
 0x15d   :  { %2051 = vmatprep.subr.bf16.mxu1 %v2234_v43  ;;  %v353_v43 = vld [vmem:[%s3410_s3 + $0x490] sm:$0xff]  ;;  %v2329_v31 = vcombine.low %v386_v15, %v390_v16 }
 0x15f   :  { %1970 = vmatpush1.bf16.msra.mxu0 %v2231_v48  ;;  %v2287_v48 = vcombine.low %v345_v37, %v349_v38  ;;  %v402_v37 = vld [vmem:[%s3410_s3 + $0x618] sm:$0xff] }
 0x160   :  { %2052 = vmatpush1.bf16.msra.mxu1 %v2233_v49  ;;  %1971 = vmatprep.subr.bf16.mxu0 %v2240_v50  ;;  %v2289_v49 = vcombine.low %v346_v56, %v350_v40  ;;  %v2296_v50 = vcombine.high %v353_v43, %v357_v44  ;;  %v406_v38 = vld [vmem:[%s3410_s3 + $0x638] sm:$0xff]  ;;  %v2337_v56 = vcombine.low %v394_v28, %v398_v29 }
 0x161   :  { %2053 = vmatprep.subr.bf16.mxu1 %v2242_v52  ;;  %v2298_v52 = vcombine.high %v354_v46, %v358_v47  ;;  %v2345_v47 = vcombine.low %v402_v37, %v406_v38 }
 0x163   :  { %1972 = vmatpush1.bf16.msra.mxu0 %v2239_v59  ;;  %v2304_v59 = vcombine.high %v361_v53, %v365_v54  ;;  %v418_v53 = vld [vmem:[%s3410_s3 + $0x698] sm:$0xff] }
 0x164   :  { %2054 = vmatpush1.bf16.msra.mxu1 %v2241_v60  ;;  %1973 = vmatprep.subr.bf16.mxu0 %v2248_v61  ;;  %v369_v61 = vld [vmem:[%s3410_s3 + $0x510] sm:$0xff]  ;;  %v422_v54 = vld [vmem:[%s3410_s3 + $0x6b8] sm:$0xff] }
 0x165   :  { %2055 = vmatprep.subr.bf16.mxu1 %v2250_v62  ;;  %v373_v62 = vld [vmem:[%s3410_s3 + $0x530] sm:$0xff] }
 0x166   :  { %v2311_v10 = vcombine.low %v369_v61, %v373_v62 }
 0x167   :  { %1974 = vmatpush1.bf16.msra.mxu0 %v2247_v4  ;;  %v2312_v4 = vcombine.high %v369_v61, %v373_v62  ;;  %v426_v61 = vld [vmem:[%s3410_s3 + $0x6d8] sm:$0xff] }
 0x168   :  { %2056 = vmatpush1.bf16.msra.mxu1 %v2249_v22  ;;  %1975 = vmatprep.subr.bf16.mxu0 %v2256_v5  ;;  %v2314_v22 = vcombine.high %v370_v63, %v374_v0  ;;  %v377_v5 = vld [vmem:[%s3410_s3 + $0x550] sm:$0xff]  ;;  %v430_v62 = vld [vmem:[%s3410_s3 + $0x6f8] sm:$0xff]  ;;  %v2361_v0 = vcombine.low %v418_v53, %v422_v54 }
 0x169   :  { %2057 = vmatprep.subr.bf16.mxu1 %v2258_v6  ;;  %v381_v6 = vld [vmem:[%s3410_s3 + $0x570] sm:$0xff] }
 0x16a   :  { %v2319_v17 = vcombine.low %v377_v5, %v381_v6 }
 0x16b   :  { %1976 = vmatpush1.bf16.msra.mxu0 %v2255_v12  ;;  %v2320_v12 = vcombine.high %v377_v5, %v381_v6  ;;  %v434_v5 = vld [vmem:[%s3410_s3 + $0x718] sm:$0xff] }
 0x16c   :  { %2058 = vmatpush1.bf16.msra.mxu1 %v2257_v35  ;;  %1977 = vmatprep.subr.bf16.mxu0 %v2264_v13  ;;  %v2322_v35 = vcombine.high %v378_v8, %v382_v9  ;;  %v385_v13 = vld [vmem:[%s3410_s3 + $0x590] sm:$0xff]  ;;  %v438_v6 = vld [vmem:[%s3410_s3 + $0x738] sm:$0xff]  ;;  %v2369_v9 = vcombine.low %v426_v61, %v430_v62 }
 0x16d   :  { %2059 = vmatprep.subr.bf16.mxu1 %v2266_v14  ;;  %v389_v14 = vld [vmem:[%s3410_s3 + $0x5b0] sm:$0xff] }
 0x16e   :  { %v2327_v30 = vcombine.low %v385_v13, %v389_v14 }
 0x16f   :  { %1978 = vmatpush1.bf16.msra.mxu0 %v2263_v19  ;;  %v2328_v19 = vcombine.high %v385_v13, %v389_v14  ;;  %v442_v13 = vld [vmem:[%s3410_s3 + $0x758] sm:$0xff] }
 0x170   :  { %2060 = vmatpush1.bf16.msra.mxu1 %v2265_v24  ;;  %1979 = vmatprep.subr.bf16.mxu0 %v2272_v26  ;;  %v2330_v24 = vcombine.high %v386_v15, %v390_v16  ;;  %v393_v26 = vld [vmem:[%s3410_s3 + $0x5d0] sm:$0xff]  ;;  %v446_v14 = vld [vmem:[%s3410_s3 + $0x778] sm:$0xff]  ;;  %v2377_v16 = vcombine.low %v434_v5, %v438_v6 }
 0x171   :  { %2061 = vmatprep.subr.bf16.mxu1 %v2274_v27  ;;  %v397_v27 = vld [vmem:[%s3410_s3 + $0x5f0] sm:$0xff] }
 0x173   :  { %1980 = vmatpush1.bf16.msra.mxu0 %v2271_v32  ;;  %v2336_v32 = vcombine.high %v393_v26, %v397_v27 }
 0x174   :  { %2062 = vmatpush1.bf16.msra.mxu1 %v2273_v33  ;;  %1990 = vmatprep.subr.bf16.mxu0 %v2280_v34  ;;  %v2338_v33 = vcombine.high %v394_v28, %v398_v29  ;;  %v401_v34 = vld [vmem:[%s3410_s3 + $0x610] sm:$0xff]  ;;  %v2385_v29 = vcombine.low %v442_v13, %v446_v14 }
 0x175   :  { %2072 = vmatprep.subr.bf16.mxu1 %v2282_v36  ;;  %v405_v36 = vld [vmem:[%s3410_s3 + $0x630] sm:$0xff] }
 0x176   :  { %1982 = vmatmul.mubr.bf16.vlgmr.msra.gmra.mrb[8].mxu0 %v2779_v58  ;;  %v2344_v40 = vcombine.high %v401_v34, %v405_v36  ;;  %v2343_v46 = vcombine.low %v401_v34, %v405_v36  ;;  %v458_v34 = vld [vmem:[%s3410_s3 + $0x7d8] sm:$0xff] }
 0x177   :  { %2064 = vmatmul.mubr.bf16.vlgmr.msra.gmra.mrb[8].mxu1 %v2779_v58  ;;  %1991 = vmatpush1.bf16.msra.mxu0 %v2279_v39  ;;  %v362_v58 = vld [vmem:[%s3410_s3 + $0x4d8] sm:$0xff]  ;;  %v2335_v39 = vcombine.low %v393_v26, %v397_v27 }
 0x178   :  { %2022 = vmatprep.mubr.bf16.mxu0 %v2797_v2  ;;  %2073 = vmatpush1.bf16.msra.mxu1 %v2281_v41  ;;  %v2306_v60 = vcombine.high %v362_v58, %v366_v55  ;;  %v2305_v3 = vcombine.low %v362_v58, %v366_v55  ;;  %v2346_v41 = vcombine.high %v402_v37, %v406_v38  ;;  %v450_v26 = vld [vmem:[%s3410_s3 + $0x798] sm:$0xff] }
 0x179   :  { %2104 = vmatprep.mubr.bf16.mxu1 %v2797_v2  ;;  %1992 = vmatprep.subr.bf16.mxu0 %v2288_v42  ;;  %v2295_v2 = vcombine.low %v353_v43, %v357_v44  ;;  %v409_v42 = vld [vmem:[%s3410_s3 + $0x650] sm:$0xff]  ;;  %v410_v44 = vld [vmem:[%s3410_s3 + $0x658] sm:$0xff] }
 0x17a   :  { %2074 = vmatprep.subr.bf16.mxu1 %v2290_v45  ;;  %v413_v43 = vld [vmem:[%s3410_s3 + $0x670] sm:$0xff]  ;;  %v414_v45 = vld [vmem:[%s3410_s3 + $0x678] sm:$0xff] }
 0x17b   :  { %1993 = vmatpush1.bf16.msra.mxu0 %v2287_v48  ;;  %v2352_v48 = vcombine.high %v409_v42, %v413_v43  ;;  %v2351_v58 = vcombine.low %v409_v42, %v413_v43  ;;  %v2353_v55 = vcombine.low %v410_v44, %v414_v45  ;;  %v454_v27 = vld [vmem:[%s3410_s3 + $0x7b8] sm:$0xff]  ;;  %v463_v42 = vld [vmem:[%s3412_s4] sm:$0xff] }
 0x17c   :  { %2075 = vmatpush1.bf16.msra.mxu1 %v2289_v49  ;;  %1994 = vmatprep.subr.bf16.mxu0 %v2296_v50  ;;  %v2354_v49 = vcombine.high %v410_v44, %v414_v45  ;;  %v417_v50 = vld [vmem:[%s3410_s3 + $0x690] sm:$0xff]  ;;  %v462_v36 = vld [vmem:[%s3410_s3 + $0x7f8] sm:$0xff]  ;;  %v2393_v38 = vcombine.low %v450_v26, %v454_v27  ;;  %v468_v43 = vrot.slane %v463_v42, %v35_v21 }
 0x17d   :  { %2076 = vmatprep.subr.bf16.mxu1 %v2298_v52  ;;  %v421_v52 = vld [vmem:[%s3410_s3 + $0x6b0] sm:$0xff]  ;;  %v476_v44 = vrot.slane %v463_v42, %v43_v51  ;;  %v472_v45 = vrot.slane %v463_v42, %v39_v23 }
 0x17e   :  { %v2359_v63 = vcombine.low %v417_v50, %v421_v52 }
 0x17f   :  { %1995 = vmatpush1.bf16.msra.mxu0 %v2295_v2  ;;  %v2360_v2 = vcombine.high %v417_v50, %v421_v52 }
 0x180   :  { %2077 = vmatpush1.bf16.msra.mxu1 %v2297_v57  ;;  %1996 = vmatprep.subr.bf16.mxu0 %v2304_v59  ;;  %v2362_v57 = vcombine.high %v418_v53, %v422_v54  ;;  %v425_v59 = vld [vmem:[%s3410_s3 + $0x6d0] sm:$0xff] }
 0x181   :  { %2078 = vmatprep.subr.bf16.mxu1 %v2306_v60  ;;  %v429_v60 = vld [vmem:[%s3410_s3 + $0x6f0] sm:$0xff] }
 0x182   :  { %v2367_v8 = vcombine.low %v425_v59, %v429_v60 }
 0x183   :  { %1997 = vmatpush1.bf16.msra.mxu0 %v2303_v1  ;;  %v2368_v1 = vcombine.high %v425_v59, %v429_v60  ;;  %v483_v59 = vsub.s32 4, %v2744_v20  ;;  %v491_v60 = vsub.s32 6, %v2744_v20 }
 0x184   :  { %2079 = vmatpush1.bf16.msra.mxu1 %v2305_v3  ;;  %1998 = vmatprep.subr.bf16.mxu0 %v2312_v4  ;;  %v2370_v3 = vcombine.high %v426_v61, %v430_v62  ;;  %v433_v4 = vld [vmem:[%s3410_s3 + $0x710] sm:$0xff]  ;;  %v487_v61 = vsub.s32 5, %v2744_v20  ;;  %v495_v62 = vsub.s32 7, %v2744_v20 }
 0x185   :  { %2080 = vmatprep.subr.bf16.mxu1 %v2314_v22  ;;  %v437_v22 = vld [vmem:[%s3410_s3 + $0x730] sm:$0xff] }
 0x186   :  { %v2375_v15 = vcombine.low %v433_v4, %v437_v22 }
 0x187   :  { %1999 = vmatpush1.bf16.msra.mxu0 %v2311_v10  ;;  %v2376_v10 = vcombine.high %v433_v4, %v437_v22 }
 0x188   :  { %2081 = vmatpush1.bf16.msra.mxu1 %v2313_v11  ;;  %2000 = vmatprep.subr.bf16.mxu0 %v2320_v12  ;;  %v2378_v11 = vcombine.high %v434_v5, %v438_v6  ;;  %v441_v12 = vld [vmem:[%s3410_s3 + $0x750] sm:$0xff] }
 0x189   :  { %2082 = vmatprep.subr.bf16.mxu1 %v2322_v35  ;;  %v445_v35 = vld [vmem:[%s3410_s3 + $0x770] sm:$0xff] }
 0x18a   :  { %v2383_v28 = vcombine.low %v441_v12, %v445_v35 }
 0x18b   :  { %2001 = vmatpush1.bf16.msra.mxu0 %v2319_v17  ;;  %v2384_v17 = vcombine.high %v441_v12, %v445_v35 }
 0x18c   :  { %2083 = vmatpush1.bf16.msra.mxu1 %v2321_v18  ;;  %2002 = vmatprep.subr.bf16.mxu0 %v2328_v19  ;;  %v2386_v18 = vcombine.high %v442_v13, %v446_v14  ;;  %v449_v19 = vld [vmem:[%s3410_s3 + $0x790] sm:$0xff] }
 0x18d   :  { %2084 = vmatprep.subr.bf16.mxu1 %v2330_v24  ;;  %v453_v24 = vld [vmem:[%s3410_s3 + $0x7b0] sm:$0xff] }
 0x18e   :  { %v2391_v37 = vcombine.low %v449_v19, %v453_v24 }
 0x18f   :  { %2003 = vmatpush1.bf16.msra.mxu0 %v2327_v30  ;;  %v2392_v30 = vcombine.high %v449_v19, %v453_v24 }
 0x190   :  { %2085 = vmatpush1.bf16.msra.mxu1 %v2329_v31  ;;  %2004 = vmatprep.subr.bf16.mxu0 %v2336_v32  ;;  %v2394_v31 = vcombine.high %v450_v26, %v454_v27  ;;  %v457_v32 = vld [vmem:[%s3410_s3 + $0x7d0] sm:$0xff] }
 0x191   :  { %2086 = vmatprep.subr.bf16.mxu1 %v2338_v33  ;;  %v461_v33 = vld [vmem:[%s3410_s3 + $0x7f0] sm:$0xff] }
 0x193   :  { %2005 = vmatpush1.bf16.msra.mxu0 %v2335_v39  ;;  %v2400_v39 = vcombine.high %v457_v32, %v461_v33 }
 0x194   :  { %2087 = vmatpush1.bf16.msra.mxu1 %v2337_v56  ;;  %2006 = vmatprep.subr.bf16.mxu0 %v2344_v40  ;;  %v2402_v56 = vcombine.high %v458_v34, %v462_v36  ;;  %v2399_v40 = vcombine.low %v457_v32, %v461_v33 }
 0x195   :  { %2088 = vmatprep.subr.bf16.mxu1 %v2346_v41  ;;  %v2401_v41 = vcombine.low %v458_v34, %v462_v36 }
 0x197   :  { %2007 = vmatpush1.bf16.msra.mxu0 %v2343_v46  ;;  %v480_v46 = vrot.slane %v463_v42, %v47_v25 }
 0x198   :  { %2089 = vmatpush1.bf16.msra.mxu1 %v2345_v47  ;;  %2008 = vmatprep.subr.bf16.mxu0 %v2352_v48 }
 0x199   :  { %2090 = vmatprep.subr.bf16.mxu1 %v2354_v49 }
 0x19b   :  { %2009 = vmatpush1.bf16.msra.mxu0 %v2351_v58 }
 0x19c   :  { %2091 = vmatpush1.bf16.msra.mxu1 %v2353_v55  ;;  %2010 = vmatprep.subr.bf16.mxu0 %v2360_v2 }
 0x19d   :  { %2092 = vmatprep.subr.bf16.mxu1 %v2362_v57 }
 0x19f   :  { %2011 = vmatpush1.bf16.msra.mxu0 %v2359_v63  ;;  %v484_v63 = vrot.slane %v463_v42, %v483_v59 }
 0x1a0   :  { %2093 = vmatpush1.bf16.msra.mxu1 %v2361_v0  ;;  %2012 = vmatprep.subr.bf16.mxu0 %v2368_v1  ;;  %v492_v0 = vrot.slane %v463_v42, %v491_v60  ;;  %v488_v1 = vrot.slane %v463_v42, %v487_v61 }
 0x1a1   :  { %2094 = vmatprep.subr.bf16.mxu1 %v2370_v3  ;;  %v496_v3 = vrot.slane %v463_v42, %v495_v62 }
 0x1a3   :  { %2013 = vmatpush1.bf16.msra.mxu0 %v2367_v8 }
 0x1a4   :  { %2095 = vmatpush1.bf16.msra.mxu1 %v2369_v9  ;;  %2014 = vmatprep.subr.bf16.mxu0 %v2376_v10 }
 0x1a5   :  { %2096 = vmatprep.subr.bf16.mxu1 %v2378_v11 }
 0x1a7   :  { %2015 = vmatpush1.bf16.msra.mxu0 %v2375_v15 }
 0x1a8   :  { %2097 = vmatpush1.bf16.msra.mxu1 %v2377_v16  ;;  %2016 = vmatprep.subr.bf16.mxu0 %v2384_v17 }
 0x1a9   :  { %2098 = vmatprep.subr.bf16.mxu1 %v2386_v18 }
 0x1ab   :  { %2017 = vmatpush1.bf16.msra.mxu0 %v2383_v28 }
 0x1ac   :  { %2099 = vmatpush1.bf16.msra.mxu1 %v2385_v29  ;;  %2018 = vmatprep.subr.bf16.mxu0 %v2392_v30 }
 0x1ad   :  { %2100 = vmatprep.subr.bf16.mxu1 %v2394_v31 }
 0x1af   :  { %2019 = vmatpush1.bf16.msra.mxu0 %v2391_v37 }
 0x1b0   :  { %2101 = vmatpush1.bf16.msra.mxu1 %v2393_v38  ;;  %2020 = vmatprep.subr.bf16.mxu0 %v2400_v39 }
 0x1b1   :  { %2102 = vmatprep.subr.bf16.mxu1 %v2402_v56 }
 0x1b3   :  { %2021 = vmatpush1.bf16.msra.mxu0 %v2399_v40 }
 0x1b4   :  { %2103 = vmatpush1.bf16.msra.mxu1 %v2401_v41 }
 0x1b6   :  { %2023 = vmatmul.mubr.bf16.vlgmr.msra.gmra.mrb[8].mxu0 %v2997_v7 }
 0x1b7   :  { %2105 = vmatmul.mubr.bf16.vlgmr.msra.gmra.mrb[8].mxu1 %v2997_v7 }
 0x209   :  { %v1860_v47 = vpop.f32.mrb[4].mxu0  ;;  %v1942_v48 = vpop.f32.mrb[4].mxu1 }
 0x20a   :  { %v2403_v49 = vadd.f32 %v1860_v47, %v468_v43  ;;  %v2405_v7 = vadd.f32 %v1942_v48, %v476_v44  ;;  %v1862_v50 = vpop.f32.mrb[5].mxu0  ;;  %v1944_v52 = vpop.f32.mrb[5].mxu1 }
 0x20b   :  { %v2404_v53 = vadd.f32 %v1862_v50, %v472_v45  ;;  %v2406_v54 = vadd.f32 %v1944_v52, %v480_v46  ;;  %v1864_v58 = vpop.f32.mrb[6].mxu0  ;;  %v1946_v55 = vpop.f32.mrb[6].mxu1 }
 0x20c   :  { %2448 = vtanh.f32 %v2403_v49  ;;  %v1865_v21 = vpop.f32.mrb[7].mxu0  ;;  %v1947_v2 = vpop.f32.mrb[7].mxu1 }
 0x20d   :  { %2450 = vtanh.f32 %v2405_v7 }
 0x20e   :  { %2452 = vtanh.f32 %v2404_v53 }
 0x20f   :  { %2454 = vtanh.f32 %v2406_v54 }
 0x216   :  { %v2449_v23 = vpop.eup %2448 }
 0x217   :  { %v2451_v51 = vpop.eup %2450  ;;  %2121 = vst [vmem:[%s3413_s5] sm:$0xff] %v2449_v23 }
 0x218   :  { %v2453_v25 = vpop.eup %2452  ;;  %2123 = vst [vmem:[%s3413_s5 + $0x10] sm:$0xff] %v2451_v51 }
 0x219   :  { %v2455_v57 = vpop.eup %2454  ;;  %2122 = vst [vmem:[%s3413_s5 + $0x8] sm:$0xff] %v2453_v25 }
 0x21a   :  { %2124 = vst [vmem:[%s3413_s5 + $0x18] sm:$0xff] %v2455_v57 }
 0x289   :  { %v2024_v4 = vpop.f32.mrb[8].mxu0 }
 0x28a   :  { %v2407_v22 = vadd.f32 %v2024_v4, %v484_v63  ;;  %v2106_v5 = vpop.f32.mrb[8].mxu1  ;;  %v2026_v6 = vpop.f32.mrb[9].mxu0 }
 0x28b   :  { %v2409_v8 = vadd.f32 %v2106_v5, %v492_v0  ;;  %v2408_v9 = vadd.f32 %v2026_v6, %v488_v1  ;;  %v2108_v10 = vpop.f32.mrb[9].mxu1  ;;  %v2028_v11 = vpop.f32.mrb[10].mxu0 }
 0x28c   :  { %2456 = vtanh.f32 %v2407_v22  ;;  %v2410_v12 = vadd.f32 %v2108_v10, %v496_v3  ;;  %v2110_v35 = vpop.f32.mrb[10].mxu1  ;;  %v2029_v13 = vpop.f32.mrb[11].mxu0 }
 0x28d   :  { %2458 = vtanh.f32 %v2409_v8  ;;  %v2111_v14 = vpop.f32.mrb[11].mxu1 }
 0x28e   :  { %2460 = vtanh.f32 %v2408_v9 }
 0x28f   :  { %2462 = vtanh.f32 %v2410_v12 }
 0x296   :  { %v2457_v20 = vpop.eup %2456 }
 0x297   :  { %v2459_v15 = vpop.eup %2458  ;;  %2125 = vst [vmem:[%s3413_s5 + $0x20] sm:$0xff] %v2457_v20 }
 0x298   :  { %v2461_v16 = vpop.eup %2460  ;;  %2127 = vst [vmem:[%s3413_s5 + $0x30] sm:$0xff] %v2459_v15 }
 0x299   :  { %v2463_v17 = vpop.eup %2462  ;;  %2126 = vst [vmem:[%s3413_s5 + $0x28] sm:$0xff] %v2461_v16 }
 0x29a   :  { %2128 = vst [vmem:[%s3413_s5 + $0x38] sm:$0xff] %v2463_v17 }

</bundles_post_ra>
